<compile_context>
chip_gen: v6e
topology: v6e:2x2x1
jax: 0.10.0
libtpu: 0.0.40
codegen_flags: <defaults>
</compile_context>

<pallas_src>
import functools

import numpy as np
import jax
import jax.numpy as jnp
from jax import lax
from jax.experimental import pallas as pl
from jax.experimental.pallas import tpu as pltpu


# ----------------------------------------------------------------------------
# Fused Pallas kernel
# ----------------------------------------------------------------------------
def fused_style_encoder_kernel(batch, n_mid, mm_dtype, with_feats, *refs):
    """Whole StyleEncoder forward in one kernel invocation.

    in_refs  = (p1, w1, a1, [s_i, w_i, a_i] * n_mid, wl, al, wh, bh)
      p1:  (B*HW1, KKCp)    layer-1 im2col patches (K zero-padded), mm_dtype
      w1:  (KKCp, C1)       layer-1 conv weight as a GEMM matrix, mm_dtype
      a*:  (3, C)           rows = [conv bias, IN gamma, IN beta], f32
      s_i: (k*k*HWo, HWi)   per-SAMPLE 0/1 gather matrix, tap-major rows
      w_i: (k*k*Cin, Cout)  fused all-tap conv weight
      wl:  (HWi*Cin, Clast) last conv (full-field -> 1x1 output) weight
      wh:  (Clast, D*S)     all per-domain head weights stacked (lane dense)
      bh:  (1, D*S)         stacked head biases, f32
    out_refs = (styles[, feats])   styles (B, D*S); feats = last-conv pre-IN
    scratch  = per-mid-layer im2col staging (B*HWo, k*k*Cin) and last-layer
               flatten staging (B, HWi*Cin), all in mm_dtype.
    """
    n_in = 3 + 3 * n_mid + 4
    n_out = 2 if with_feats else 1
    in_refs = refs[:n_in]
    out_refs = refs[n_in:n_in + n_out]
    scratch_refs = refs[n_in + n_out:]

    p1_ref, w1_ref, a1_ref = in_refs[0:3]
    mid_refs = in_refs[3:3 + 3 * n_mid]
    wl_ref, al_ref, wh_ref, bh_ref = in_refs[3 + 3 * n_mid:]
    out_ref = out_refs[0]
    feat_ref = out_refs[1] if with_feats else None
    im_scratch = scratch_refs[:n_mid]
    flat_scratch = scratch_refs[n_mid]

    eps = jnp.float32(1e-5)
    slope = jnp.float32(0.01)                 # nn.LeakyReLU() default slope

    def leaky(v):
        return jnp.where(v >= 0, v, slope * v)

    def mm(a, b):                             # MXU GEMM, f32 accumulation
        return jnp.dot(a, b, preferred_element_type=jnp.float32)

    def instance_norm_affine(v, aff):
        """v: (batch*hw, C) f32; per-sample InstanceNorm over hw rows + affine."""
        rows, chans = v.shape
        hw = rows // batch
        gamma, beta = aff[1:2, :], aff[2:3, :]
        if hw == 1:
            # 1x1 spatial map: mean == x, var == 0 -> output == beta exactly.
            # (Faithful to the PyTorch module: IN follows every conv, even the
            #  last one.)  No rsqrt / VPU math needed.
            return jnp.broadcast_to(beta, v.shape)
        v3 = v.reshape(batch, hw, chans)      # leading-dim split: layout clean
        mean = jnp.mean(v3, axis=1, keepdims=True)
        cent = v3 - mean
        var = jnp.mean(cent * cent, axis=1, keepdims=True)   # centered variance
        return (cent * lax.rsqrt(var + eps)).reshape(rows, chans) * gamma + beta

    # ---- layer 1: im2col GEMM + bias + LeakyReLU + InstanceNorm ------------
    a1 = a1_ref[...]
    y = mm(p1_ref[...], w1_ref[...])
    y = instance_norm_affine(leaky(y + a1[0:1, :]), a1)      # activations in f32

    # ---- layers 2..L-1: per-sample gather GEMM + ONE fused-tap weight GEMM -
    for li in range(n_mid):
        s_ref, w_ref, a_ref = mid_refs[3 * li:3 * li + 3]
        im_ref = im_scratch[li]
        a = a_ref[...]
        s = s_ref[...]
        cin = y.shape[1]
        hwi = s.shape[1]
        kk = w_ref.shape[0] // cin
        hwo = s.shape[0] // kk
        y_c = y.astype(mm_dtype)              # cast ONCE per layer (hoisted)
        for b in range(batch):                # block-diagonal exploit: no B^2 blocks
            yb = y_c[b * hwi:(b + 1) * hwi, :]
            gb = mm(s, yb).astype(mm_dtype)   # exact 0/1 row gather, all k*k taps
            for t in range(kk):               # stage tap t at lane offset t*cin
                im_ref[b * hwo:(b + 1) * hwo, t * cin:(t + 1) * cin] = \
                    gb[t * hwo:(t + 1) * hwo, :]
        acc = mm(im_ref[...], w_ref[...])     # one (B*HWo, kk*Cin)x(kk*Cin, Cout)
        pre = leaky(acc + a[0:1, :])
        y = instance_norm_affine(pre, a)

    # ---- last conv: full-field k x k, 1x1 output -> a single flatten GEMM --
    al = al_ref[...]
    cin = y.shape[1]
    hwi = y.shape[0] // batch
    y_c = y.astype(mm_dtype)
    for b in range(batch):                    # stage (pixel, channel) patch order
        for p_ in range(hwi):
            flat_scratch[b:b + 1, p_ * cin:(p_ + 1) * cin] = \
                y_c[b * hwi + p_:b * hwi + p_ + 1, :]
    pre = leaky(mm(flat_scratch[...], wl_ref[...]) + al[0:1, :])
    if with_feats:
        feat_ref[...] = pre                   # pre-IN features (debug/check only)
    y = instance_norm_affine(pre, al)         # hw == 1 -> beta broadcast

    # ---- flatten (1x1 spatial) + ALL per-domain heads as one GEMM ----------
    out_ref[...] = mm(y.astype(mm_dtype), wh_ref[...]) + bh_ref[...]


# ----------------------------------------------------------------------------
# Host-side (trace-time) helpers
# ----------------------------------------------------------------------------
def _im2col(x_nhwc, k, pad, stride):
    """(B,H,W,C) -> (B, Ho*Wo, k*k*C), patch column order (kh, kw, cin)."""
    B, H, W, C = x_nhwc.shape
    xp = jnp.pad(x_nhwc, ((0, 0), (pad, pad), (pad, pad), (0, 0)))
    Ho = (H + 2 * pad - k) // stride + 1
    Wo = (W + 2 * pad - k) // stride + 1
    pieces = [xp[:, di:di + stride * Ho:stride, dj:dj + stride * Wo:stride, :]
              for di in range(k) for dj in range(k)]
    patches = jnp.stack(pieces, axis=3)                  # (B, Ho, Wo, k*k, C)
    return patches.reshape(B, Ho * Wo, k * k * C), Ho, Wo


def _gather_matrix(Hi, Wi, k, pad, stride):
    """Per-SAMPLE 0/1 gather matrix, tap-major rows:
       S[t*Ho*Wo + o, ii*Wi + jj] = 1 iff input pixel (ii,jj) is tap t of
       output pixel o (zero rows for padding taps)."""
    Ho = (Hi + 2 * pad - k) // stride + 1
    Wo = (Wi + 2 * pad - k) // stride + 1
    S = np.zeros((k * k * Ho * Wo, Hi * Wi), np.float32)
    for di in range(k):
        for dj in range(k):
            t = di * k + dj
            for oi in range(Ho):
                for oj in range(Wo):
                    ii = stride * oi + di - pad
                    jj = stride * oj + dj - pad
                    if 0 <= ii < Hi and 0 <= jj < Wi:
                        S[t * Ho * Wo + oi * Wo + oj, ii * Wi + jj] = 1.0
    return S, Ho, Wo


# ----------------------------------------------------------------------------
# Fused forward wrapper
# ----------------------------------------------------------------------------
def style_encoder_forward(x_nchw, params, layer_cfg,
                          matmul_dtype=jnp.bfloat16, return_feats=False):
    """Returns style codes (B, D, S) [and, if return_feats, the last conv
    block's pre-InstanceNorm activations (B, C_last) for verification]."""
    B = x_nchw.shape[0]
    x = jnp.transpose(x_nchw, (0, 2, 3, 1)).astype(jnp.float32)   # NHWC

    conv_params = params["conv"]
    g = lambda t: t.astype(matmul_dtype)      # GEMM operands only (exact for S)
    L = len(layer_cfg)
    n_mid = L - 2
    scratch_shapes = []

    # ---- layer 1: host-side im2col (tiny, Cin=3); pad K 27 -> 32 -----------
    k0, pad0, s0 = layer_cfg[0]
    w0 = conv_params[0]["w"]                  # (C1, Cin, k, k)
    c_out = w0.shape[0]
    patches, Hc, Wc = _im2col(x, k0, pad0, s0)
    hw1 = Hc * Wc
    kkc = patches.shape[-1]
    kkcp = ((kkc + 7) // 8) * 8
    p1 = jnp.zeros((B * hw1, kkcp), jnp.float32)
    p1 = p1.at[:, :kkc].set(patches.reshape(B * hw1, kkc))
    w1 = jnp.zeros((kkcp, c_out), jnp.float32)
    w1 = w1.at[:kkc, :].set(jnp.transpose(w0, (2, 3, 1, 0)).reshape(kkc, c_out))
    a1 = jnp.stack([conv_params[0]["b"], conv_params[0]["gamma"],
                    conv_params[0]["beta"]], axis=0)
    inputs = [g(p1), g(w1), a1]
    flops = 2 * (B * hw1) * kkcp * c_out
    c_in = c_out

    # ---- layers 2..L-1: per-sample gather matrices + fused-tap weights -----
    for li in range(1, L - 1):
        k, pad, stride = layer_cfg[li]
        lp = conv_params[li]
        c_out = lp["w"].shape[0]
        S_np, Ho, Wo = _gather_matrix(Hc, Wc, k, pad, stride)
        wk = jnp.transpose(lp["w"], (2, 3, 1, 0)).reshape(k * k * c_in, c_out)
        a = jnp.stack([lp["b"], lp["gamma"], lp["beta"]], axis=0)
        inputs += [g(jnp.asarray(S_np)), g(wk), a]
        scratch_shapes.append(pltpu.VMEM((B * Ho * Wo, k * k * c_in), matmul_dtype))
        flops += 2 * B * (k * k * Ho * Wo) * (Hc * Wc) * c_in        # gather
        flops += 2 * (B * Ho * Wo) * (k * k * c_in) * c_out          # weight
        Hc, Wc, c_in = Ho, Wo, c_out

    # ---- last conv: full-field kernel -> single flatten GEMM ---------------
    kL, padL, sL = layer_cfg[-1]
    lpL = conv_params[-1]
    c_last = lpL["w"].shape[0]
    assert padL == 0 and sL == 1 and kL == Hc and kL == Wc, \
        "StyleEncoder's last conv must consume the whole feature map (1x1 out)"
    wl = jnp.transpose(lpL["w"], (2, 3, 1, 0)).reshape(kL * kL * c_in, c_last)
    al = jnp.stack([lpL["b"], lpL["gamma"], lpL["beta"]], axis=0)
    inputs += [g(wl), al]
    scratch_shapes.append(pltpu.VMEM((B, kL * kL * c_in), matmul_dtype))
    flops += 2 * B * (kL * kL * c_in) * c_last

    # ---- all per-domain linear heads as one lane-dense GEMM ----------------
    Wd, bd = params["head_w"], params["head_b"]          # (D,F,S), (D,1,S)
    D, F, Sd = Wd.shape
    assert F == c_last
    wh = jnp.transpose(Wd, (1, 0, 2)).reshape(F, D * Sd)
    bh = bd.reshape(1, D * Sd)
    inputs += [g(wh), bh]
    flops += 2 * B * F * D * Sd

    bytes_accessed = sum(int(np.prod(t.shape)) * t.dtype.itemsize for t in inputs)
    bytes_accessed += B * D * Sd * 4 + (B * c_last * 4 if return_feats else 0)
    n_trans = B * sum(cp["w"].shape[0] for cp in conv_params[:-1])   # rsqrts

    vmem = pl.BlockSpec(memory_space=pltpu.MemorySpace.VMEM)
    if return_feats:
        out_shape = (jax.ShapeDtypeStruct((B, D * Sd), jnp.float32),
                     jax.ShapeDtypeStruct((B, c_last), jnp.float32))
        out_specs = (vmem, vmem)
    else:
        out_shape = jax.ShapeDtypeStruct((B, D * Sd), jnp.float32)
        out_specs = vmem

    result = pl.pallas_call(
        functools.partial(fused_style_encoder_kernel, B, n_mid, matmul_dtype,
                          return_feats),
        out_shape=out_shape,
        in_specs=[vmem] * len(inputs),
        out_specs=out_specs,
        scratch_shapes=scratch_shapes,
        cost_estimate=pl.CostEstimate(flops=int(flops),
                                      transcendentals=int(n_trans),
                                      bytes_accessed=int(bytes_accessed)),
    )(*inputs)

    if return_feats:
        styles, feats = result
        return styles.reshape(B, D, Sd), feats
    return result.reshape(B, D, Sd)


# ----------------------------------------------------------------------------
# Plain-JAX reference (for correctness check)
# ----------------------------------------------------------------------------
def reference_forward(x_nchw, params, layer_cfg):
    x = jnp.transpose(x_nchw, (0, 2, 3, 1))
    feats = None
    n = len(layer_cfg)
    for li, ((k, pad, stride), lp) in enumerate(zip(layer_cfg, params["conv"])):
        w_hwio = jnp.transpose(lp["w"], (2, 3, 1, 0))
        y = lax.conv_general_dilated(
            x, w_hwio, window_strides=(stride, stride),
            padding=[(pad, pad), (pad, pad)],
            dimension_numbers=("NHWC", "HWIO", "NHWC"))
        y = y + lp["b"][None, None, None, :]
        y = jnp.where(y >= 0, y, 0.01 * y)
        if li == n - 1:
            feats = y.reshape(y.shape[0], -1)
        mean = jnp.mean(y, axis=(1, 2), keepdims=True)
        var = jnp.mean((y - mean) ** 2, axis=(1, 2), keepdims=True)
        y = (y - mean) * lax.rsqrt(var + 1e-5)
        x = y * lp["gamma"][None, None, None, :] + lp["beta"][None, None, None, :]
    B = x.shape[0]
    yy = x.reshape(B, -1)
    outs = [yy @ params["head_w"][d] + params["head_b"][d, 0]
            for d in range(params["head_w"].shape[0])]
    return jnp.stack(outs, axis=1), feats


# ----------------------------------------------------------------------------
# Parameter construction (deterministic, synthetic)
# ----------------------------------------------------------------------------
def make_params(key, filters, ks, feat_dim, style_dim, num_domains):
    params = {"conv": []}
    for i, k in enumerate(ks):
        key, k1, k2, k3, k4 = jax.random.split(key, 5)
        cin, cout = filters[i], filters[i + 1]
        scale = 1.0 / jnp.sqrt(cin * k * k)
        params["conv"].append({
            "w": jax.random.normal(k1, (cout, cin, k, k), jnp.float32) * scale,
            "b": jax.random.normal(k2, (cout,), jnp.float32) * 0.1,
            "gamma": 1.0 + 0.1 * jax.random.normal(k3, (cout,), jnp.float32),
            "beta": 0.1 * jax.random.normal(k4, (cout,), jnp.float32),
        })
    key, k1, k2 = jax.random.split(key, 3)
    params["head_w"] = jax.random.normal(
        k1, (num_domains, feat_dim, style_dim), jnp.float32) / jnp.sqrt(feat_dim)
    params["head_b"] = 0.1 * jax.random.normal(
        k2, (num_domains, 1, style_dim), jnp.float32)
    return params


# ----------------------------------------------------------------------------
if __name__ == "__main__":
    # Small StyleEncoder: img_size=16 -> p = log2(16) - 2 = 2, i.e. 3 conv blocks.
    img_size = 16
    p = int(np.log2(img_size)) - 2
    style_dim = 64
    num_domains = 2
    batch = 2

    filters = [3, 64, 64, 128] + [128] * (p - 2)
    ks = [3] * p + [4]
    pads = [1] * p + [0]
    strides = [2] * p + [1]
    layer_cfg = tuple(zip(ks, pads, strides))

    key = jax.random.PRNGKey(0)
    key, xkey = jax.random.split(key)
    x = jax.random.normal(xkey, (batch, 3, img_size, img_size), jnp.float32)

    params = make_params(key, filters, ks, feat_dim=128,
                         style_dim=style_dim, num_domains=num_domains)

    ref_styles, ref_feats = reference_forward(x, params, layer_cfg)
    ref_styles = jax.block_until_ready(ref_styles)
    ref_feats = jax.block_until_ready(ref_feats)

    # 1) Production path: bf16 MXU operands (f32 accumulate), no debug output.
    fwd = jax.jit(functools.partial(style_encoder_forward, layer_cfg=layer_cfg))
    styles = jax.block_until_ready(fwd(x, params))
    assert styles.shape == (batch, num_domains, style_dim), styles.shape
    assert jnp.allclose(styles, ref_styles, rtol=3e-2, atol=3e-2), \
        float(jnp.max(jnp.abs(styles - ref_styles)))

    # 2) f32-operand verification path (tight tolerances, debug features on):
    #    the pre-IN feats exercise the whole in-kernel conv chain; the 1e-1
    #    slack covers XLA's default f32 conv precision on TPU in the reference.
    fwd_f32 = jax.jit(functools.partial(style_encoder_forward,
                                        layer_cfg=layer_cfg,
                                        matmul_dtype=jnp.float32,
                                        return_feats=True))
    styles32, feats32 = jax.block_until_ready(fwd_f32(x, params))
    assert jnp.allclose(styles32, ref_styles, rtol=1e-4, atol=1e-3), \
        float(jnp.max(jnp.abs(styles32 - ref_styles)))
    assert jnp.allclose(feats32, ref_feats, rtol=1e-1, atol=1e-1), \
        float(jnp.max(jnp.abs(feats32 - ref_feats)))

    # 3) bf16 conv-chain sanity (loose tolerance: bf16 operand rounding).
    fwd_bf16_dbg = jax.jit(functools.partial(style_encoder_forward,
                                             layer_cfg=layer_cfg,
                                             return_feats=True))
    _, feats_bf16 = jax.block_until_ready(fwd_bf16_dbg(x, params))
    assert jnp.allclose(feats_bf16, ref_feats, rtol=2e-1, atol=2e-1), \
        float(jnp.max(jnp.abs(feats_bf16 - ref_feats)))

    print("KERNEL_OK")
</pallas_src>

<mosaic_0001>
module attributes {stable_mosaic.version = 11 : i64} {
  func.func @fused_style_encoder_kernel(%arg0: memref<128x32xbf16, #tpu.memory_space<vmem>>, %arg1: memref<32x64xbf16, #tpu.memory_space<vmem>>, %arg2: memref<3x64xf32, #tpu.memory_space<vmem>>, %arg3: memref<144x64xbf16, #tpu.memory_space<vmem>>, %arg4: memref<576x64xbf16, #tpu.memory_space<vmem>>, %arg5: memref<3x64xf32, #tpu.memory_space<vmem>>, %arg6: memref<1024x128xbf16, #tpu.memory_space<vmem>>, %arg7: memref<3x128xf32, #tpu.memory_space<vmem>>, %arg8: memref<128x128xbf16, #tpu.memory_space<vmem>>, %arg9: memref<1x128xf32, #tpu.memory_space<vmem>>, %arg10: memref<2x128xf32, #tpu.memory_space<vmem>>, %arg11: memref<32x576xbf16, #tpu.memory_space<vmem>>, %arg12: memref<2x1024xbf16, #tpu.memory_space<vmem>>) attributes {dimension_semantics = [], scalar_prefetch = 0 : i64, scratch_operands = 2 : i64, tpu.core_type = #tpu.core_type<tc>} {
    %c0 = arith.constant 0 : index
    %c0_0 = arith.constant 0 : index
    %0 = vector.load %arg2[%c0, %c0_0] : memref<3x64xf32, #tpu.memory_space<vmem>>, vector<3x64xf32>
    %c0_1 = arith.constant 0 : index
    %c0_2 = arith.constant 0 : index
    %1 = vector.load %arg0[%c0_1, %c0_2] : memref<128x32xbf16, #tpu.memory_space<vmem>>, vector<128x32xbf16>
    %c0_3 = arith.constant 0 : index
    %c0_4 = arith.constant 0 : index
    %2 = vector.load %arg1[%c0_3, %c0_4] : memref<32x64xbf16, #tpu.memory_space<vmem>>, vector<32x64xbf16>
    %cst = arith.constant dense<0.000000e+00> : vector<128x64xf32>
    %3 = tpu.matmul %1, %2, %cst {dimension_numbers = #tpu.dot_dimension_numbers<[1], [0], [0], [1], [0, 0, 1, 1], [], []>} : vector<128x32xbf16>, vector<32x64xbf16>, vector<128x64xf32> -> vector<128x64xf32>
    %4 = vector.extract_strided_slice %0 {offsets = [0, 0], sizes = [1, 64], strides = [1, 1]} : vector<3x64xf32> to vector<1x64xf32>
    %5 = vector.broadcast %4 : vector<1x64xf32> to vector<128x64xf32>
    %6 = arith.addf %3, %5 : vector<128x64xf32>
    %cst_5 = arith.constant 0.000000e+00 : f32
    %7 = vector.broadcast %cst_5 : f32 to vector<128x64xf32>
    %8 = arith.cmpf oge, %6, %7 : vector<128x64xf32>
    %cst_6 = arith.constant 0.00999999977 : f32
    %9 = vector.broadcast %cst_6 : f32 to vector<128x64xf32>
    %10 = arith.mulf %9, %6 : vector<128x64xf32>
    %11 = arith.select %8, %6, %10 : vector<128x64xi1>, vector<128x64xf32>
    %12 = vector.extract_strided_slice %0 {offsets = [1, 0], sizes = [1, 64], strides = [1, 1]} : vector<3x64xf32> to vector<1x64xf32>
    %13 = vector.extract_strided_slice %0 {offsets = [2, 0], sizes = [1, 64], strides = [1, 1]} : vector<3x64xf32> to vector<1x64xf32>
    %14 = vector.shape_cast %11 : vector<128x64xf32> to vector<2x64x64xf32>
    %cst_7 = arith.constant dense<0.000000e+00> : vector<2x64xf32>
    %15 = vector.multi_reduction <add>, %14, %cst_7 [1] : vector<2x64x64xf32> to vector<2x64xf32>
    %16 = vector.shape_cast %15 : vector<2x64xf32> to vector<2x1x64xf32>
    %cst_8 = arith.constant 6.400000e+01 : f32
    %17 = vector.broadcast %cst_8 : f32 to vector<2x1x64xf32>
    %18 = arith.divf %16, %17 : vector<2x1x64xf32>
    %19 = vector.broadcast %18 : vector<2x1x64xf32> to vector<2x64x64xf32>
    %20 = arith.subf %14, %19 : vector<2x64x64xf32>
    %21 = arith.mulf %20, %20 : vector<2x64x64xf32>
    %cst_9 = arith.constant dense<0.000000e+00> : vector<2x64xf32>
    %22 = vector.multi_reduction <add>, %21, %cst_9 [1] : vector<2x64x64xf32> to vector<2x64xf32>
    %23 = vector.shape_cast %22 : vector<2x64xf32> to vector<2x1x64xf32>
    %cst_10 = arith.constant 6.400000e+01 : f32
    %24 = vector.broadcast %cst_10 : f32 to vector<2x1x64xf32>
    %25 = arith.divf %23, %24 : vector<2x1x64xf32>
    %cst_11 = arith.constant 9.99999974E-6 : f32
    %26 = vector.broadcast %cst_11 : f32 to vector<2x1x64xf32>
    %27 = arith.addf %25, %26 : vector<2x1x64xf32>
    %28 = math.rsqrt %27 : vector<2x1x64xf32>
    %29 = vector.broadcast %28 : vector<2x1x64xf32> to vector<2x64x64xf32>
    %30 = arith.mulf %20, %29 : vector<2x64x64xf32>
    %31 = vector.shape_cast %30 : vector<2x64x64xf32> to vector<128x64xf32>
    %32 = vector.broadcast %12 : vector<1x64xf32> to vector<128x64xf32>
    %33 = arith.mulf %31, %32 : vector<128x64xf32>
    %34 = vector.broadcast %13 : vector<1x64xf32> to vector<128x64xf32>
    %35 = arith.addf %33, %34 : vector<128x64xf32>
    %c0_12 = arith.constant 0 : index
    %c0_13 = arith.constant 0 : index
    %36 = vector.load %arg5[%c0_12, %c0_13] : memref<3x64xf32, #tpu.memory_space<vmem>>, vector<3x64xf32>
    %c0_14 = arith.constant 0 : index
    %c0_15 = arith.constant 0 : index
    %37 = vector.load %arg3[%c0_14, %c0_15] : memref<144x64xbf16, #tpu.memory_space<vmem>>, vector<144x64xbf16>
    %38 = arith.truncf %35 : vector<128x64xf32> to vector<128x64xbf16>
    %39 = vector.extract_strided_slice %38 {offsets = [0, 0], sizes = [64, 64], strides = [1, 1]} : vector<128x64xbf16> to vector<64x64xbf16>
    %cst_16 = arith.constant dense<0.000000e+00> : vector<144x64xf32>
    %40 = tpu.matmul %37, %39, %cst_16 {dimension_numbers = #tpu.dot_dimension_numbers<[1], [0], [0], [1], [0, 0, 1, 1], [], []>} : vector<144x64xbf16>, vector<64x64xbf16>, vector<144x64xf32> -> vector<144x64xf32>
    %41 = arith.truncf %40 : vector<144x64xf32> to vector<144x64xbf16>
    %42 = vector.extract_strided_slice %41 {offsets = [0, 0], sizes = [16, 64], strides = [1, 1]} : vector<144x64xbf16> to vector<16x64xbf16>
    %c0_17 = arith.constant 0 : index
    %c0_18 = arith.constant 0 : index
    %43 = vector.load %arg11[%c0_17, %c0_18] : memref<32x576xbf16, #tpu.memory_space<vmem>>, vector<16x64xbf16>
    tpu.vector_store %arg11[%c0_17, %c0_18], %42 {strides = array<i32>} : memref<32x576xbf16, #tpu.memory_space<vmem>>, vector<16x64xbf16>,
    %44 = vector.extract_strided_slice %41 {offsets = [16, 0], sizes = [16, 64], strides = [1, 1]} : vector<144x64xbf16> to vector<16x64xbf16>
    %c0_19 = arith.constant 0 : index
    %c64 = arith.constant 64 : index
    %45 = vector.load %arg11[%c0_19, %c64] : memref<32x576xbf16, #tpu.memory_space<vmem>>, vector<16x64xbf16>
    tpu.vector_store %arg11[%c0_19, %c64], %44 {strides = array<i32>} : memref<32x576xbf16, #tpu.memory_space<vmem>>, vector<16x64xbf16>,
    %46 = vector.extract_strided_slice %41 {offsets = [32, 0], sizes = [16, 64], strides = [1, 1]} : vector<144x64xbf16> to vector<16x64xbf16>
    %c0_20 = arith.constant 0 : index
    %c128 = arith.constant 128 : index
    %47 = vector.load %arg11[%c0_20, %c128] : memref<32x576xbf16, #tpu.memory_space<vmem>>, vector<16x64xbf16>
    tpu.vector_store %arg11[%c0_20, %c128], %46 {strides = array<i32>} : memref<32x576xbf16, #tpu.memory_space<vmem>>, vector<16x64xbf16>,
    %48 = vector.extract_strided_slice %41 {offsets = [48, 0], sizes = [16, 64], strides = [1, 1]} : vector<144x64xbf16> to vector<16x64xbf16>
    %c0_21 = arith.constant 0 : index
    %c192 = arith.constant 192 : index
    %49 = vector.load %arg11[%c0_21, %c192] : memref<32x576xbf16, #tpu.memory_space<vmem>>, vector<16x64xbf16>
    tpu.vector_store %arg11[%c0_21, %c192], %48 {strides = array<i32>} : memref<32x576xbf16, #tpu.memory_space<vmem>>, vector<16x64xbf16>,
    %50 = vector.extract_strided_slice %41 {offsets = [64, 0], sizes = [16, 64], strides = [1, 1]} : vector<144x64xbf16> to vector<16x64xbf16>
    %c0_22 = arith.constant 0 : index
    %c256 = arith.constant 256 : index
    %51 = vector.load %arg11[%c0_22, %c256] : memref<32x576xbf16, #tpu.memory_space<vmem>>, vector<16x64xbf16>
    tpu.vector_store %arg11[%c0_22, %c256], %50 {strides = array<i32>} : memref<32x576xbf16, #tpu.memory_space<vmem>>, vector<16x64xbf16>,
    %52 = vector.extract_strided_slice %41 {offsets = [80, 0], sizes = [16, 64], strides = [1, 1]} : vector<144x64xbf16> to vector<16x64xbf16>
    %c0_23 = arith.constant 0 : index
    %c320 = arith.constant 320 : index
    %53 = vector.load %arg11[%c0_23, %c320] : memref<32x576xbf16, #tpu.memory_space<vmem>>, vector<16x64xbf16>
    tpu.vector_store %arg11[%c0_23, %c320], %52 {strides = array<i32>} : memref<32x576xbf16, #tpu.memory_space<vmem>>, vector<16x64xbf16>,
    %54 = vector.extract_strided_slice %41 {offsets = [96, 0], sizes = [16, 64], strides = [1, 1]} : vector<144x64xbf16> to vector<16x64xbf16>
    %c0_24 = arith.constant 0 : index
    %c384 = arith.constant 384 : index
    %55 = vector.load %arg11[%c0_24, %c384] : memref<32x576xbf16, #tpu.memory_space<vmem>>, vector<16x64xbf16>
    tpu.vector_store %arg11[%c0_24, %c384], %54 {strides = array<i32>} : memref<32x576xbf16, #tpu.memory_space<vmem>>, vector<16x64xbf16>,
    %56 = vector.extract_strided_slice %41 {offsets = [112, 0], sizes = [16, 64], strides = [1, 1]} : vector<144x64xbf16> to vector<16x64xbf16>
    %c0_25 = arith.constant 0 : index
    %c448 = arith.constant 448 : index
    %57 = vector.load %arg11[%c0_25, %c448] : memref<32x576xbf16, #tpu.memory_space<vmem>>, vector<16x64xbf16>
    tpu.vector_store %arg11[%c0_25, %c448], %56 {strides = array<i32>} : memref<32x576xbf16, #tpu.memory_space<vmem>>, vector<16x64xbf16>,
    %58 = vector.extract_strided_slice %41 {offsets = [128, 0], sizes = [16, 64], strides = [1, 1]} : vector<144x64xbf16> to vector<16x64xbf16>
    %c0_26 = arith.constant 0 : index
    %c512 = arith.constant 512 : index
    %59 = vector.load %arg11[%c0_26, %c512] : memref<32x576xbf16, #tpu.memory_space<vmem>>, vector<16x64xbf16>
    tpu.vector_store %arg11[%c0_26, %c512], %58 {strides = array<i32>} : memref<32x576xbf16, #tpu.memory_space<vmem>>, vector<16x64xbf16>,
    %60 = vector.extract_strided_slice %38 {offsets = [64, 0], sizes = [64, 64], strides = [1, 1]} : vector<128x64xbf16> to vector<64x64xbf16>
    %cst_27 = arith.constant dense<0.000000e+00> : vector<144x64xf32>
    %61 = tpu.matmul %37, %60, %cst_27 {dimension_numbers = #tpu.dot_dimension_numbers<[1], [0], [0], [1], [0, 0, 1, 1], [], []>} : vector<144x64xbf16>, vector<64x64xbf16>, vector<144x64xf32> -> vector<144x64xf32>
    %62 = arith.truncf %61 : vector<144x64xf32> to vector<144x64xbf16>
    %63 = vector.extract_strided_slice %62 {offsets = [0, 0], sizes = [16, 64], strides = [1, 1]} : vector<144x64xbf16> to vector<16x64xbf16>
    %c16 = arith.constant 16 : index
    %c0_28 = arith.constant 0 : index
    %64 = vector.load %arg11[%c16, %c0_28] : memref<32x576xbf16, #tpu.memory_space<vmem>>, vector<16x64xbf16>
    tpu.vector_store %arg11[%c16, %c0_28], %63 {strides = array<i32>} : memref<32x576xbf16, #tpu.memory_space<vmem>>, vector<16x64xbf16>,
    %65 = vector.extract_strided_slice %62 {offsets = [16, 0], sizes = [16, 64], strides = [1, 1]} : vector<144x64xbf16> to vector<16x64xbf16>
    %c16_29 = arith.constant 16 : index
    %c64_30 = arith.constant 64 : index
    %66 = vector.load %arg11[%c16_29, %c64_30] : memref<32x576xbf16, #tpu.memory_space<vmem>>, vector<16x64xbf16>
    tpu.vector_store %arg11[%c16_29, %c64_30], %65 {strides = array<i32>} : memref<32x576xbf16, #tpu.memory_space<vmem>>, vector<16x64xbf16>,
    %67 = vector.extract_strided_slice %62 {offsets = [32, 0], sizes = [16, 64], strides = [1, 1]} : vector<144x64xbf16> to vector<16x64xbf16>
    %c16_31 = arith.constant 16 : index
    %c128_32 = arith.constant 128 : index
    %68 = vector.load %arg11[%c16_31, %c128_32] : memref<32x576xbf16, #tpu.memory_space<vmem>>, vector<16x64xbf16>
    tpu.vector_store %arg11[%c16_31, %c128_32], %67 {strides = array<i32>} : memref<32x576xbf16, #tpu.memory_space<vmem>>, vector<16x64xbf16>,
    %69 = vector.extract_strided_slice %62 {offsets = [48, 0], sizes = [16, 64], strides = [1, 1]} : vector<144x64xbf16> to vector<16x64xbf16>
    %c16_33 = arith.constant 16 : index
    %c192_34 = arith.constant 192 : index
    %70 = vector.load %arg11[%c16_33, %c192_34] : memref<32x576xbf16, #tpu.memory_space<vmem>>, vector<16x64xbf16>
    tpu.vector_store %arg11[%c16_33, %c192_34], %69 {strides = array<i32>} : memref<32x576xbf16, #tpu.memory_space<vmem>>, vector<16x64xbf16>,
    %71 = vector.extract_strided_slice %62 {offsets = [64, 0], sizes = [16, 64], strides = [1, 1]} : vector<144x64xbf16> to vector<16x64xbf16>
    %c16_35 = arith.constant 16 : index
    %c256_36 = arith.constant 256 : index
    %72 = vector.load %arg11[%c16_35, %c256_36] : memref<32x576xbf16, #tpu.memory_space<vmem>>, vector<16x64xbf16>
    tpu.vector_store %arg11[%c16_35, %c256_36], %71 {strides = array<i32>} : memref<32x576xbf16, #tpu.memory_space<vmem>>, vector<16x64xbf16>,
    %73 = vector.extract_strided_slice %62 {offsets = [80, 0], sizes = [16, 64], strides = [1, 1]} : vector<144x64xbf16> to vector<16x64xbf16>
    %c16_37 = arith.constant 16 : index
    %c320_38 = arith.constant 320 : index
    %74 = vector.load %arg11[%c16_37, %c320_38] : memref<32x576xbf16, #tpu.memory_space<vmem>>, vector<16x64xbf16>
    tpu.vector_store %arg11[%c16_37, %c320_38], %73 {strides = array<i32>} : memref<32x576xbf16, #tpu.memory_space<vmem>>, vector<16x64xbf16>,
    %75 = vector.extract_strided_slice %62 {offsets = [96, 0], sizes = [16, 64], strides = [1, 1]} : vector<144x64xbf16> to vector<16x64xbf16>
    %c16_39 = arith.constant 16 : index
    %c384_40 = arith.constant 384 : index
    %76 = vector.load %arg11[%c16_39, %c384_40] : memref<32x576xbf16, #tpu.memory_space<vmem>>, vector<16x64xbf16>
    tpu.vector_store %arg11[%c16_39, %c384_40], %75 {strides = array<i32>} : memref<32x576xbf16, #tpu.memory_space<vmem>>, vector<16x64xbf16>,
    %77 = vector.extract_strided_slice %62 {offsets = [112, 0], sizes = [16, 64], strides = [1, 1]} : vector<144x64xbf16> to vector<16x64xbf16>
    %c16_41 = arith.constant 16 : index
    %c448_42 = arith.constant 448 : index
    %78 = vector.load %arg11[%c16_41, %c448_42] : memref<32x576xbf16, #tpu.memory_space<vmem>>, vector<16x64xbf16>
    tpu.vector_store %arg11[%c16_41, %c448_42], %77 {strides = array<i32>} : memref<32x576xbf16, #tpu.memory_space<vmem>>, vector<16x64xbf16>,
    %79 = vector.extract_strided_slice %62 {offsets = [128, 0], sizes = [16, 64], strides = [1, 1]} : vector<144x64xbf16> to vector<16x64xbf16>
    %c16_43 = arith.constant 16 : index
    %c512_44 = arith.constant 512 : index
    %80 = vector.load %arg11[%c16_43, %c512_44] : memref<32x576xbf16, #tpu.memory_space<vmem>>, vector<16x64xbf16>
    tpu.vector_store %arg11[%c16_43, %c512_44], %79 {strides = array<i32>} : memref<32x576xbf16, #tpu.memory_space<vmem>>, vector<16x64xbf16>,
    %c0_45 = arith.constant 0 : index
    %c0_46 = arith.constant 0 : index
    %81 = vector.load %arg11[%c0_45, %c0_46] : memref<32x576xbf16, #tpu.memory_space<vmem>>, vector<32x576xbf16>
    %c0_47 = arith.constant 0 : index
    %c0_48 = arith.constant 0 : index
    %82 = vector.load %arg4[%c0_47, %c0_48] : memref<576x64xbf16, #tpu.memory_space<vmem>>, vector<576x64xbf16>
    %cst_49 = arith.constant dense<0.000000e+00> : vector<32x64xf32>
    %83 = tpu.matmul %81, %82, %cst_49 {dimension_numbers = #tpu.dot_dimension_numbers<[1], [0], [0], [1], [0, 0, 1, 1], [], []>} : vector<32x576xbf16>, vector<576x64xbf16>, vector<32x64xf32> -> vector<32x64xf32>
    %84 = vector.extract_strided_slice %36 {offsets = [0, 0], sizes = [1, 64], strides = [1, 1]} : vector<3x64xf32> to vector<1x64xf32>
    %85 = vector.broadcast %84 : vector<1x64xf32> to vector<32x64xf32>
    %86 = arith.addf %83, %85 : vector<32x64xf32>
    %cst_50 = arith.constant 0.000000e+00 : f32
    %87 = vector.broadcast %cst_50 : f32 to vector<32x64xf32>
    %88 = arith.cmpf oge, %86, %87 : vector<32x64xf32>
    %cst_51 = arith.constant 0.00999999977 : f32
    %89 = vector.broadcast %cst_51 : f32 to vector<32x64xf32>
    %90 = arith.mulf %89, %86 : vector<32x64xf32>
    %91 = arith.select %88, %86, %90 : vector<32x64xi1>, vector<32x64xf32>
    %92 = vector.extract_strided_slice %36 {offsets = [1, 0], sizes = [1, 64], strides = [1, 1]} : vector<3x64xf32> to vector<1x64xf32>
    %93 = vector.extract_strided_slice %36 {offsets = [2, 0], sizes = [1, 64], strides = [1, 1]} : vector<3x64xf32> to vector<1x64xf32>
    %94 = vector.shape_cast %91 : vector<32x64xf32> to vector<2x16x64xf32>
    %cst_52 = arith.constant dense<0.000000e+00> : vector<2x64xf32>
    %95 = vector.multi_reduction <add>, %94, %cst_52 [1] : vector<2x16x64xf32> to vector<2x64xf32>
    %96 = vector.shape_cast %95 : vector<2x64xf32> to vector<2x1x64xf32>
    %cst_53 = arith.constant 1.600000e+01 : f32
    %97 = vector.broadcast %cst_53 : f32 to vector<2x1x64xf32>
    %98 = arith.divf %96, %97 : vector<2x1x64xf32>
    %99 = vector.broadcast %98 : vector<2x1x64xf32> to vector<2x16x64xf32>
    %100 = arith.subf %94, %99 : vector<2x16x64xf32>
    %101 = arith.mulf %100, %100 : vector<2x16x64xf32>
    %cst_54 = arith.constant dense<0.000000e+00> : vector<2x64xf32>
    %102 = vector.multi_reduction <add>, %101, %cst_54 [1] : vector<2x16x64xf32> to vector<2x64xf32>
    %103 = vector.shape_cast %102 : vector<2x64xf32> to vector<2x1x64xf32>
    %cst_55 = arith.constant 1.600000e+01 : f32
    %104 = vector.broadcast %cst_55 : f32 to vector<2x1x64xf32>
    %105 = arith.divf %103, %104 : vector<2x1x64xf32>
    %cst_56 = arith.constant 9.99999974E-6 : f32
    %106 = vector.broadcast %cst_56 : f32 to vector<2x1x64xf32>
    %107 = arith.addf %105, %106 : vector<2x1x64xf32>
    %108 = math.rsqrt %107 : vector<2x1x64xf32>
    %109 = vector.broadcast %108 : vector<2x1x64xf32> to vector<2x16x64xf32>
    %110 = arith.mulf %100, %109 : vector<2x16x64xf32>
    %111 = vector.shape_cast %110 : vector<2x16x64xf32> to vector<32x64xf32>
    %112 = vector.broadcast %92 : vector<1x64xf32> to vector<32x64xf32>
    %113 = arith.mulf %111, %112 : vector<32x64xf32>
    %114 = vector.broadcast %93 : vector<1x64xf32> to vector<32x64xf32>
    %115 = arith.addf %113, %114 : vector<32x64xf32>
    %c0_57 = arith.constant 0 : index
    %c0_58 = arith.constant 0 : index
    %116 = vector.load %arg7[%c0_57, %c0_58] : memref<3x128xf32, #tpu.memory_space<vmem>>, vector<3x128xf32>
    %117 = arith.truncf %115 : vector<32x64xf32> to vector<32x64xbf16>
    %118 = vector.extract_strided_slice %117 {offsets = [0, 0], sizes = [1, 64], strides = [1, 1]} : vector<32x64xbf16> to vector<1x64xbf16>
    %c0_59 = arith.constant 0 : index
    %c0_60 = arith.constant 0 : index
    %119 = vector.load %arg12[%c0_59, %c0_60] : memref<2x1024xbf16, #tpu.memory_space<vmem>>, vector<1x64xbf16>
    tpu.vector_store %arg12[%c0_59, %c0_60], %118 {strides = array<i32>} : memref<2x1024xbf16, #tpu.memory_space<vmem>>, vector<1x64xbf16>,
    %120 = vector.extract_strided_slice %117 {offsets = [1, 0], sizes = [1, 64], strides = [1, 1]} : vector<32x64xbf16> to vector<1x64xbf16>
    %c0_61 = arith.constant 0 : index
    %c64_62 = arith.constant 64 : index
    %121 = vector.load %arg12[%c0_61, %c64_62] : memref<2x1024xbf16, #tpu.memory_space<vmem>>, vector<1x64xbf16>
    tpu.vector_store %arg12[%c0_61, %c64_62], %120 {strides = array<i32>} : memref<2x1024xbf16, #tpu.memory_space<vmem>>, vector<1x64xbf16>,
    %122 = vector.extract_strided_slice %117 {offsets = [2, 0], sizes = [1, 64], strides = [1, 1]} : vector<32x64xbf16> to vector<1x64xbf16>
    %c0_63 = arith.constant 0 : index
    %c128_64 = arith.constant 128 : index
    %123 = vector.load %arg12[%c0_63, %c128_64] : memref<2x1024xbf16, #tpu.memory_space<vmem>>, vector<1x64xbf16>
    tpu.vector_store %arg12[%c0_63, %c128_64], %122 {strides = array<i32>} : memref<2x1024xbf16, #tpu.memory_space<vmem>>, vector<1x64xbf16>,
    %124 = vector.extract_strided_slice %117 {offsets = [3, 0], sizes = [1, 64], strides = [1, 1]} : vector<32x64xbf16> to vector<1x64xbf16>
    %c0_65 = arith.constant 0 : index
    %c192_66 = arith.constant 192 : index
    %125 = vector.load %arg12[%c0_65, %c192_66] : memref<2x1024xbf16, #tpu.memory_space<vmem>>, vector<1x64xbf16>
    tpu.vector_store %arg12[%c0_65, %c192_66], %124 {strides = array<i32>} : memref<2x1024xbf16, #tpu.memory_space<vmem>>, vector<1x64xbf16>,
    %126 = vector.extract_strided_slice %117 {offsets = [4, 0], sizes = [1, 64], strides = [1, 1]} : vector<32x64xbf16> to vector<1x64xbf16>
    %c0_67 = arith.constant 0 : index
    %c256_68 = arith.constant 256 : index
    %127 = vector.load %arg12[%c0_67, %c256_68] : memref<2x1024xbf16, #tpu.memory_space<vmem>>, vector<1x64xbf16>
    tpu.vector_store %arg12[%c0_67, %c256_68], %126 {strides = array<i32>} : memref<2x1024xbf16, #tpu.memory_space<vmem>>, vector<1x64xbf16>,
    %128 = vector.extract_strided_slice %117 {offsets = [5, 0], sizes = [1, 64], strides = [1, 1]} : vector<32x64xbf16> to vector<1x64xbf16>
    %c0_69 = arith.constant 0 : index
    %c320_70 = arith.constant 320 : index
    %129 = vector.load %arg12[%c0_69, %c320_70] : memref<2x1024xbf16, #tpu.memory_space<vmem>>, vector<1x64xbf16>
    tpu.vector_store %arg12[%c0_69, %c320_70], %128 {strides = array<i32>} : memref<2x1024xbf16, #tpu.memory_space<vmem>>, vector<1x64xbf16>,
    %130 = vector.extract_strided_slice %117 {offsets = [6, 0], sizes = [1, 64], strides = [1, 1]} : vector<32x64xbf16> to vector<1x64xbf16>
    %c0_71 = arith.constant 0 : index
    %c384_72 = arith.constant 384 : index
    %131 = vector.load %arg12[%c0_71, %c384_72] : memref<2x1024xbf16, #tpu.memory_space<vmem>>, vector<1x64xbf16>
    tpu.vector_store %arg12[%c0_71, %c384_72], %130 {strides = array<i32>} : memref<2x1024xbf16, #tpu.memory_space<vmem>>, vector<1x64xbf16>,
    %132 = vector.extract_strided_slice %117 {offsets = [7, 0], sizes = [1, 64], strides = [1, 1]} : vector<32x64xbf16> to vector<1x64xbf16>
    %c0_73 = arith.constant 0 : index
    %c448_74 = arith.constant 448 : index
    %133 = vector.load %arg12[%c0_73, %c448_74] : memref<2x1024xbf16, #tpu.memory_space<vmem>>, vector<1x64xbf16>
    tpu.vector_store %arg12[%c0_73, %c448_74], %132 {strides = array<i32>} : memref<2x1024xbf16, #tpu.memory_space<vmem>>, vector<1x64xbf16>,
    %134 = vector.extract_strided_slice %117 {offsets = [8, 0], sizes = [1, 64], strides = [1, 1]} : vector<32x64xbf16> to vector<1x64xbf16>
    %c0_75 = arith.constant 0 : index
    %c512_76 = arith.constant 512 : index
    %135 = vector.load %arg12[%c0_75, %c512_76] : memref<2x1024xbf16, #tpu.memory_space<vmem>>, vector<1x64xbf16>
    tpu.vector_store %arg12[%c0_75, %c512_76], %134 {strides = array<i32>} : memref<2x1024xbf16, #tpu.memory_space<vmem>>, vector<1x64xbf16>,
    %136 = vector.extract_strided_slice %117 {offsets = [9, 0], sizes = [1, 64], strides = [1, 1]} : vector<32x64xbf16> to vector<1x64xbf16>
    %c0_77 = arith.constant 0 : index
    %c576 = arith.constant 576 : index
    %137 = vector.load %arg12[%c0_77, %c576] : memref<2x1024xbf16, #tpu.memory_space<vmem>>, vector<1x64xbf16>
    tpu.vector_store %arg12[%c0_77, %c576], %136 {strides = array<i32>} : memref<2x1024xbf16, #tpu.memory_space<vmem>>, vector<1x64xbf16>,
    %138 = vector.extract_strided_slice %117 {offsets = [10, 0], sizes = [1, 64], strides = [1, 1]} : vector<32x64xbf16> to vector<1x64xbf16>
    %c0_78 = arith.constant 0 : index
    %c640 = arith.constant 640 : index
    %139 = vector.load %arg12[%c0_78, %c640] : memref<2x1024xbf16, #tpu.memory_space<vmem>>, vector<1x64xbf16>
    tpu.vector_store %arg12[%c0_78, %c640], %138 {strides = array<i32>} : memref<2x1024xbf16, #tpu.memory_space<vmem>>, vector<1x64xbf16>,
    %140 = vector.extract_strided_slice %117 {offsets = [11, 0], sizes = [1, 64], strides = [1, 1]} : vector<32x64xbf16> to vector<1x64xbf16>
    %c0_79 = arith.constant 0 : index
    %c704 = arith.constant 704 : index
    %141 = vector.load %arg12[%c0_79, %c704] : memref<2x1024xbf16, #tpu.memory_space<vmem>>, vector<1x64xbf16>
    tpu.vector_store %arg12[%c0_79, %c704], %140 {strides = array<i32>} : memref<2x1024xbf16, #tpu.memory_space<vmem>>, vector<1x64xbf16>,
    %142 = vector.extract_strided_slice %117 {offsets = [12, 0], sizes = [1, 64], strides = [1, 1]} : vector<32x64xbf16> to vector<1x64xbf16>
    %c0_80 = arith.constant 0 : index
    %c768 = arith.constant 768 : index
    %143 = vector.load %arg12[%c0_80, %c768] : memref<2x1024xbf16, #tpu.memory_space<vmem>>, vector<1x64xbf16>
    tpu.vector_store %arg12[%c0_80, %c768], %142 {strides = array<i32>} : memref<2x1024xbf16, #tpu.memory_space<vmem>>, vector<1x64xbf16>,
    %144 = vector.extract_strided_slice %117 {offsets = [13, 0], sizes = [1, 64], strides = [1, 1]} : vector<32x64xbf16> to vector<1x64xbf16>
    %c0_81 = arith.constant 0 : index
    %c832 = arith.constant 832 : index
    %145 = vector.load %arg12[%c0_81, %c832] : memref<2x1024xbf16, #tpu.memory_space<vmem>>, vector<1x64xbf16>
    tpu.vector_store %arg12[%c0_81, %c832], %144 {strides = array<i32>} : memref<2x1024xbf16, #tpu.memory_space<vmem>>, vector<1x64xbf16>,
    %146 = vector.extract_strided_slice %117 {offsets = [14, 0], sizes = [1, 64], strides = [1, 1]} : vector<32x64xbf16> to vector<1x64xbf16>
    %c0_82 = arith.constant 0 : index
    %c896 = arith.constant 896 : index
    %147 = vector.load %arg12[%c0_82, %c896] : memref<2x1024xbf16, #tpu.memory_space<vmem>>, vector<1x64xbf16>
    tpu.vector_store %arg12[%c0_82, %c896], %146 {strides = array<i32>} : memref<2x1024xbf16, #tpu.memory_space<vmem>>, vector<1x64xbf16>,
    %148 = vector.extract_strided_slice %117 {offsets = [15, 0], sizes = [1, 64], strides = [1, 1]} : vector<32x64xbf16> to vector<1x64xbf16>
    %c0_83 = arith.constant 0 : index
    %c960 = arith.constant 960 : index
    %149 = vector.load %arg12[%c0_83, %c960] : memref<2x1024xbf16, #tpu.memory_space<vmem>>, vector<1x64xbf16>
    tpu.vector_store %arg12[%c0_83, %c960], %148 {strides = array<i32>} : memref<2x1024xbf16, #tpu.memory_space<vmem>>, vector<1x64xbf16>,
    %150 = vector.extract_strided_slice %117 {offsets = [16, 0], sizes = [1, 64], strides = [1, 1]} : vector<32x64xbf16> to vector<1x64xbf16>
    %c1 = arith.constant 1 : index
    %c0_84 = arith.constant 0 : index
    %151 = vector.load %arg12[%c1, %c0_84] : memref<2x1024xbf16, #tpu.memory_space<vmem>>, vector<1x64xbf16>
    tpu.vector_store %arg12[%c1, %c0_84], %150 {strides = array<i32>} : memref<2x1024xbf16, #tpu.memory_space<vmem>>, vector<1x64xbf16>,
    %152 = vector.extract_strided_slice %117 {offsets = [17, 0], sizes = [1, 64], strides = [1, 1]} : vector<32x64xbf16> to vector<1x64xbf16>
    %c1_85 = arith.constant 1 : index
    %c64_86 = arith.constant 64 : index
    %153 = vector.load %arg12[%c1_85, %c64_86] : memref<2x1024xbf16, #tpu.memory_space<vmem>>, vector<1x64xbf16>
    tpu.vector_store %arg12[%c1_85, %c64_86], %152 {strides = array<i32>} : memref<2x1024xbf16, #tpu.memory_space<vmem>>, vector<1x64xbf16>,
    %154 = vector.extract_strided_slice %117 {offsets = [18, 0], sizes = [1, 64], strides = [1, 1]} : vector<32x64xbf16> to vector<1x64xbf16>
    %c1_87 = arith.constant 1 : index
    %c128_88 = arith.constant 128 : index
    %155 = vector.load %arg12[%c1_87, %c128_88] : memref<2x1024xbf16, #tpu.memory_space<vmem>>, vector<1x64xbf16>
    tpu.vector_store %arg12[%c1_87, %c128_88], %154 {strides = array<i32>} : memref<2x1024xbf16, #tpu.memory_space<vmem>>, vector<1x64xbf16>,
    %156 = vector.extract_strided_slice %117 {offsets = [19, 0], sizes = [1, 64], strides = [1, 1]} : vector<32x64xbf16> to vector<1x64xbf16>
    %c1_89 = arith.constant 1 : index
    %c192_90 = arith.constant 192 : index
    %157 = vector.load %arg12[%c1_89, %c192_90] : memref<2x1024xbf16, #tpu.memory_space<vmem>>, vector<1x64xbf16>
    tpu.vector_store %arg12[%c1_89, %c192_90], %156 {strides = array<i32>} : memref<2x1024xbf16, #tpu.memory_space<vmem>>, vector<1x64xbf16>,
    %158 = vector.extract_strided_slice %117 {offsets = [20, 0], sizes = [1, 64], strides = [1, 1]} : vector<32x64xbf16> to vector<1x64xbf16>
    %c1_91 = arith.constant 1 : index
    %c256_92 = arith.constant 256 : index
    %159 = vector.load %arg12[%c1_91, %c256_92] : memref<2x1024xbf16, #tpu.memory_space<vmem>>, vector<1x64xbf16>
    tpu.vector_store %arg12[%c1_91, %c256_92], %158 {strides = array<i32>} : memref<2x1024xbf16, #tpu.memory_space<vmem>>, vector<1x64xbf16>,
    %160 = vector.extract_strided_slice %117 {offsets = [21, 0], sizes = [1, 64], strides = [1, 1]} : vector<32x64xbf16> to vector<1x64xbf16>
    %c1_93 = arith.constant 1 : index
    %c320_94 = arith.constant 320 : index
    %161 = vector.load %arg12[%c1_93, %c320_94] : memref<2x1024xbf16, #tpu.memory_space<vmem>>, vector<1x64xbf16>
    tpu.vector_store %arg12[%c1_93, %c320_94], %160 {strides = array<i32>} : memref<2x1024xbf16, #tpu.memory_space<vmem>>, vector<1x64xbf16>,
    %162 = vector.extract_strided_slice %117 {offsets = [22, 0], sizes = [1, 64], strides = [1, 1]} : vector<32x64xbf16> to vector<1x64xbf16>
    %c1_95 = arith.constant 1 : index
    %c384_96 = arith.constant 384 : index
    %163 = vector.load %arg12[%c1_95, %c384_96] : memref<2x1024xbf16, #tpu.memory_space<vmem>>, vector<1x64xbf16>
    tpu.vector_store %arg12[%c1_95, %c384_96], %162 {strides = array<i32>} : memref<2x1024xbf16, #tpu.memory_space<vmem>>, vector<1x64xbf16>,
    %164 = vector.extract_strided_slice %117 {offsets = [23, 0], sizes = [1, 64], strides = [1, 1]} : vector<32x64xbf16> to vector<1x64xbf16>
    %c1_97 = arith.constant 1 : index
    %c448_98 = arith.constant 448 : index
    %165 = vector.load %arg12[%c1_97, %c448_98] : memref<2x1024xbf16, #tpu.memory_space<vmem>>, vector<1x64xbf16>
    tpu.vector_store %arg12[%c1_97, %c448_98], %164 {strides = array<i32>} : memref<2x1024xbf16, #tpu.memory_space<vmem>>, vector<1x64xbf16>,
    %166 = vector.extract_strided_slice %117 {offsets = [24, 0], sizes = [1, 64], strides = [1, 1]} : vector<32x64xbf16> to vector<1x64xbf16>
    %c1_99 = arith.constant 1 : index
    %c512_100 = arith.constant 512 : index
    %167 = vector.load %arg12[%c1_99, %c512_100] : memref<2x1024xbf16, #tpu.memory_space<vmem>>, vector<1x64xbf16>
    tpu.vector_store %arg12[%c1_99, %c512_100], %166 {strides = array<i32>} : memref<2x1024xbf16, #tpu.memory_space<vmem>>, vector<1x64xbf16>,
    %168 = vector.extract_strided_slice %117 {offsets = [25, 0], sizes = [1, 64], strides = [1, 1]} : vector<32x64xbf16> to vector<1x64xbf16>
    %c1_101 = arith.constant 1 : index
    %c576_102 = arith.constant 576 : index
    %169 = vector.load %arg12[%c1_101, %c576_102] : memref<2x1024xbf16, #tpu.memory_space<vmem>>, vector<1x64xbf16>
    tpu.vector_store %arg12[%c1_101, %c576_102], %168 {strides = array<i32>} : memref<2x1024xbf16, #tpu.memory_space<vmem>>, vector<1x64xbf16>,
    %170 = vector.extract_strided_slice %117 {offsets = [26, 0], sizes = [1, 64], strides = [1, 1]} : vector<32x64xbf16> to vector<1x64xbf16>
    %c1_103 = arith.constant 1 : index
    %c640_104 = arith.constant 640 : index
    %171 = vector.load %arg12[%c1_103, %c640_104] : memref<2x1024xbf16, #tpu.memory_space<vmem>>, vector<1x64xbf16>
    tpu.vector_store %arg12[%c1_103, %c640_104], %170 {strides = array<i32>} : memref<2x1024xbf16, #tpu.memory_space<vmem>>, vector<1x64xbf16>,
    %172 = vector.extract_strided_slice %117 {offsets = [27, 0], sizes = [1, 64], strides = [1, 1]} : vector<32x64xbf16> to vector<1x64xbf16>
    %c1_105 = arith.constant 1 : index
    %c704_106 = arith.constant 704 : index
    %173 = vector.load %arg12[%c1_105, %c704_106] : memref<2x1024xbf16, #tpu.memory_space<vmem>>, vector<1x64xbf16>
    tpu.vector_store %arg12[%c1_105, %c704_106], %172 {strides = array<i32>} : memref<2x1024xbf16, #tpu.memory_space<vmem>>, vector<1x64xbf16>,
    %174 = vector.extract_strided_slice %117 {offsets = [28, 0], sizes = [1, 64], strides = [1, 1]} : vector<32x64xbf16> to vector<1x64xbf16>
    %c1_107 = arith.constant 1 : index
    %c768_108 = arith.constant 768 : index
    %175 = vector.load %arg12[%c1_107, %c768_108] : memref<2x1024xbf16, #tpu.memory_space<vmem>>, vector<1x64xbf16>
    tpu.vector_store %arg12[%c1_107, %c768_108], %174 {strides = array<i32>} : memref<2x1024xbf16, #tpu.memory_space<vmem>>, vector<1x64xbf16>,
    %176 = vector.extract_strided_slice %117 {offsets = [29, 0], sizes = [1, 64], strides = [1, 1]} : vector<32x64xbf16> to vector<1x64xbf16>
    %c1_109 = arith.constant 1 : index
    %c832_110 = arith.constant 832 : index
    %177 = vector.load %arg12[%c1_109, %c832_110] : memref<2x1024xbf16, #tpu.memory_space<vmem>>, vector<1x64xbf16>
    tpu.vector_store %arg12[%c1_109, %c832_110], %176 {strides = array<i32>} : memref<2x1024xbf16, #tpu.memory_space<vmem>>, vector<1x64xbf16>,
    %178 = vector.extract_strided_slice %117 {offsets = [30, 0], sizes = [1, 64], strides = [1, 1]} : vector<32x64xbf16> to vector<1x64xbf16>
    %c1_111 = arith.constant 1 : index
    %c896_112 = arith.constant 896 : index
    %179 = vector.load %arg12[%c1_111, %c896_112] : memref<2x1024xbf16, #tpu.memory_space<vmem>>, vector<1x64xbf16>
    tpu.vector_store %arg12[%c1_111, %c896_112], %178 {strides = array<i32>} : memref<2x1024xbf16, #tpu.memory_space<vmem>>, vector<1x64xbf16>,
    %180 = vector.extract_strided_slice %117 {offsets = [31, 0], sizes = [1, 64], strides = [1, 1]} : vector<32x64xbf16> to vector<1x64xbf16>
    %c1_113 = arith.constant 1 : index
    %c960_114 = arith.constant 960 : index
    %181 = vector.load %arg12[%c1_113, %c960_114] : memref<2x1024xbf16, #tpu.memory_space<vmem>>, vector<1x64xbf16>
    tpu.vector_store %arg12[%c1_113, %c960_114], %180 {strides = array<i32>} : memref<2x1024xbf16, #tpu.memory_space<vmem>>, vector<1x64xbf16>,
    %182 = vector.extract_strided_slice %116 {offsets = [2, 0], sizes = [1, 128], strides = [1, 1]} : vector<3x128xf32> to vector<1x128xf32>
    %183 = vector.shape_cast %182 : vector<1x128xf32> to vector<1x128xf32>
    %184 = vector.broadcast %183 : vector<1x128xf32> to vector<2x128xf32>
    %185 = arith.truncf %184 : vector<2x128xf32> to vector<2x128xbf16>
    %c0_115 = arith.constant 0 : index
    %c0_116 = arith.constant 0 : index
    %186 = vector.load %arg8[%c0_115, %c0_116] : memref<128x128xbf16, #tpu.memory_space<vmem>>, vector<128x128xbf16>
    %cst_117 = arith.constant dense<0.000000e+00> : vector<2x128xf32>
    %187 = tpu.matmul %185, %186, %cst_117 {dimension_numbers = #tpu.dot_dimension_numbers<[1], [0], [0], [1], [0, 0, 1, 1], [], []>} : vector<2x128xbf16>, vector<128x128xbf16>, vector<2x128xf32> -> vector<2x128xf32>
    %c0_118 = arith.constant 0 : index
    %c0_119 = arith.constant 0 : index
    %188 = vector.load %arg9[%c0_118, %c0_119] : memref<1x128xf32, #tpu.memory_space<vmem>>, vector<1x128xf32>
    %189 = vector.broadcast %188 : vector<1x128xf32> to vector<2x128xf32>
    %190 = arith.addf %187, %189 : vector<2x128xf32>
    %c0_120 = arith.constant 0 : index
    %c0_121 = arith.constant 0 : index
    %191 = vector.load %arg10[%c0_120, %c0_121] : memref<2x128xf32, #tpu.memory_space<vmem>>, vector<2x128xf32>
    tpu.vector_store %arg10[%c0_120, %c0_121], %190 {strides = array<i32>} : memref<2x128xf32, #tpu.memory_space<vmem>>, vector<2x128xf32>,
    return
  }
}

</mosaic_0001>

<bundles_post_ra>
// kernel: style_encoder_forward.1
= control target key start
LH: loop header
LB: loop body
LE: loop exit
PB: predicated region body
PF: predicated region fallthrough
CT: control target
= control target key end

     0   :  { %vm113_vm0 = vcmask 261120   ;;  %v2555_v10 = vmov 0.0   ;;  %v57_v11 = vlaneseq  ;;  %vm2556_vm1 = vmmov 0   ;;  %s3377_s1 = inlined_call_operand.vmem [shape: bf16[32,64], index: 1, kind: input, shape index: {}]   ;;  %s3378_s6 = inlined_call_operand.vmem [shape: bf16[1024,128], index: 6, kind: input, shape index: {}]   ;;  %s3379_s0 = inlined_call_operand.vmem [shape: bf16[128,32], index: 0, kind: input, shape index: {}]   ;;  %s3380_s3 = inlined_call_operand.vmem [shape: bf16[144,64], index: 3, kind: input, shape index: {}]   ;;  %s3381_s2 = inlined_call_operand.vmem [shape: f32[3,64], index: 2, kind: input, shape index: {}]   ;;  %s3382_s4 = inlined_call_operand.vmem [shape: bf16[576,64], index: 4, kind: input, shape index: {}]   ;;  %s3383_s8 = inlined_call_operand.vmem [shape: bf16[128,128], index: 8, kind: input, shape index: {}]   ;;  %s3384_s7 = inlined_call_operand.vmem [shape: f32[3,128], index: 7, kind: input, shape index: {}]   ;;  %s3385_s5 = inlined_call_operand.vmem [shape: f32[3,64], index: 5, kind: input, shape index: {}]   ;;  %s3386_s9 = inlined_call_operand.vmem [shape: f32[1,128], index: 9, kind: input, shape index: {}]   ;;  %s3387_s10 = inlined_call_operand.vmem [shape: f32[2,128], index: 10, kind: output, shape index: {}]  }
   0x1   :  { %v2470_v0 = vld [vmem:[%s3377_s1 + $0x8] sm:$0xff]   ;;  %v2471_v1 = vld [vmem:[%s3377_s1] sm:$0xff]   ;;  %v2474_v4 = vld [vmem:[%s3379_s0 + $0x10] sm:$0xff]   ;;  %2346 = vmatprep.subr.bf16.mxu1 %v2555_v10  ;;  %2354 = vmatprep.mubr.msk.bf16.mxu1 %vm2556_vm1, %v2555_v10  ;;  %vm283_vm5 = vcmask 523264  }
   0x2   :  { %2326 = vmatprep.subr.bf16.mxu0 %v2470_v0  ;;  %v2472_v2 = vld [vmem:[%s3379_s0] sm:$0xff]   ;;  %v2473_v3 = vld [vmem:[%s3379_s0 + $0x8] sm:$0xff]   ;;  %v2475_v5 = vld [vmem:[%s3379_s0 + $0x18] sm:$0xff]   ;;  %v2654_v12 = vshrl.u32 %v57_v11, 7 }
   0x3   :  { %2327 = vmatpush3.bf16.msra.mxu0 %v2470_v0  ;;  %2330 = vmatprep.mubr.msk.bf16.mxu0 %vm113_vm0, %v2472_v2  ;;  %v2476_v6 = vld [vmem:[%s3379_s0 + $0x20] sm:$0xff]   ;;  %v2477_v7 = vld [vmem:[%s3379_s0 + $0x28] sm:$0xff]   ;;  %v2478_v8 = vld [vmem:[%s3379_s0 + $0x30] sm:$0xff]  }
   0x4   :  { %2328 = vmatprep.subr.bf16.mxu0 %v2471_v1  ;;  %v2479_v9 = vld [vmem:[%s3379_s0 + $0x38] sm:$0xff]   ;;  %v59_v13 = vsub.s32 0, %v2654_v12  ;;  %v2664_v14 = vld [vmem:[%s3381_s2] sm:$0x7]  ;;  %s2557_s0 = smov 64  }
   0x6   :  { %v2669_v15 = vrot.slane %v2664_v14, %v59_v13 }
   0x7   :  { %2329 = vmatpush3.bf16.msra.mxu0 %v2471_v1 }
   0x8   :  { %2390 = vmatprep.subr.bf16.mxu0 %v2555_v10 }
   0xa   :  { %2331 = vmatmul.mubr.msk.bf16.vlgmr.msra.gmra.mxu0 %vm113_vm0, %v2473_v3 }
   0xb   :  { %2334 = vmatprep.mubr.msk.bf16.mxu0 %vm113_vm0, %v2474_v4 }
  0x12   :  { %2335 = vmatmul.mubr.msk.bf16.gmra.mxu0 %vm113_vm0, %v2475_v5 }
  0x13   :  { %2338 = vmatprep.mubr.msk.bf16.mxu0 %vm113_vm0, %v2476_v6 }
  0x1a   :  { %2339 = vmatmul.mubr.msk.bf16.gmra.mxu0 %vm113_vm0, %v2477_v7 }
  0x1b   :  { %2342 = vmatprep.mubr.msk.bf16.mxu0 %vm113_vm0, %v2478_v8 }
  0x22   :  { %2343 = vmatmul.mubr.msk.bf16.gmra.mxu0 %vm113_vm0, %v2479_v9 }
  0x23   :  { %2398 = vmatprep.mubr.msk.bf16.mxu0 %vm2556_vm1, %v2555_v10 }
  0xca   :  { %v2332_v16 = vpop.f32.mrf.mxu0 }
  0xcb   :  { %v181_v18 = vadd.f32 %v2332_v16, %v2669_v15 }
  0xcc   :  { %v172_v17 = vpop.f32.mrf.mxu0 }
  0xcd   :  { %v173_v19 = vadd.f32 %v172_v17, %v2669_v15  ;;  %v253_v24 = vmul.f32 0.01, %v181_v18  ;;  %vm237_vm3 = vcmp.ge.f32.partialorder %v181_v18, 0.0 }
  0xce   :  { %v2333_v20 = vpop.f32.mrf.mxu0 }
  0xcf   :  { %v251_v21 = vmul.f32 0.01, %v173_v19  ;;  %v184_v22 = vadd.f32 %v2333_v20, %v2669_v15  ;;  %vm235_vm2 = vcmp.ge.f32.partialorder %v173_v19, 0.0  ;;  %v2677_v31 = vsel %vm237_vm3, %v181_v18, %v253_v24 }
  0xd0   :  { %v175_v23 = vpop.f32.mrf.mxu0  ;;  %v287_v41 = vsel %vm283_vm5, %v2677_v31, 0.0 }
  0xd1   :  { %v176_v25 = vadd.f32 %v175_v23, %v2669_v15  ;;  %v2675_v27 = vsel %vm235_vm2, %v173_v19, %v251_v21  ;;  %v254_v28 = vmul.f32 0.01, %v184_v22  ;;  %vm238_vm6 = vcmp.ge.f32.partialorder %v184_v22, 0.0 }
  0xd2   :  { %v2336_v26 = vpop.f32.mrf.mxu0  ;;  %v284_v35 = vsel %vm283_vm5, %v2675_v27, 0.0 }
  0xd3   :  { %vm236_vm4 = vcmp.ge.f32.partialorder %v176_v25, 0.0  ;;  %v252_v29 = vmul.f32 0.01, %v176_v25  ;;  %v197_v33 = vadd.f32 %v2336_v26, %v2669_v15  ;;  %v2687_v38 = vsel %vm238_vm6, %v184_v22, %v254_v28 }
  0xd4   :  { %v188_v30 = vpop.f32.mrf.mxu0  ;;  %v289_v48 = vsel %vm283_vm5, %v2687_v38, 0.0  ;;  %vm699_vm6 = vcmask 1043968  }
  0xd5   :  { %v2679_v32 = vsel %vm236_vm4, %v176_v25, %v252_v29  ;;  %v189_v34 = vadd.f32 %v188_v30, %v2669_v15  ;;  %v257_v45 = vmul.f32 0.01, %v197_v33  ;;  %vm241_vm8 = vcmp.ge.f32.partialorder %v197_v33, 0.0 }
  0xd6   :  { %v285_v36 = vsel %vm283_vm5, %v2679_v32, 0.0  ;;  %v2337_v37 = vpop.f32.mrf.mxu0  ;;  %vm685_vm4 = vcmask 519168  }
  0xd7   :  { %v286_v39 = vadd.f32 %v285_v36, %v284_v35  ;;  %vm239_vm7 = vcmp.ge.f32.partialorder %v189_v34, 0.0  ;;  %v255_v40 = vmul.f32 0.01, %v189_v34  ;;  %v200_v42 = vadd.f32 %v2337_v37, %v2669_v15 }
  0xd8   :  { %v191_v43 = vpop.f32.mrf.mxu0  ;;  %v2699_v55 = vsel %vm241_vm8, %v197_v33, %v257_v45 }
  0xd9   :  { %v288_v44 = vadd.f32 %v287_v41, %v286_v39  ;;  %v2692_v46 = vsel %vm239_vm7, %v189_v34, %v255_v40  ;;  %v192_v47 = vadd.f32 %v191_v43, %v2669_v15  ;;  %v258_v51 = vmul.f32 0.01, %v200_v42 }
  0xda   :  { %v2340_v49 = vpop.f32.mrf.mxu0  ;;  %v291_v53 = vsel %vm283_vm5, %v2692_v46, 0.0  ;;  %vm242_vm10 = vcmp.ge.f32.partialorder %v200_v42, 0.0  ;;  %v295_v1 = vsel %vm283_vm5, %v2699_v55, 0.0 }
  0xdb   :  { %v290_v50 = vadd.f32 %v289_v48, %v288_v44  ;;  %vm240_vm9 = vcmp.ge.f32.partialorder %v192_v47, 0.0  ;;  %v256_v52 = vmul.f32 0.01, %v192_v47  ;;  %v213_v59 = vadd.f32 %v2340_v49, %v2669_v15 }
  0xdc   :  { %v204_v54 = vpop.f32.mrf.mxu0  ;;  %v2707_v62 = vsel %vm242_vm10, %v200_v42, %v258_v51  ;;  %vm1584_vm10 = vsmask.f32 256 }
  0xdd   :  { %v292_v56 = vadd.f32 %v291_v53, %v290_v50  ;;  %v2701_v57 = vsel %vm240_vm9, %v192_v47, %v256_v52  ;;  %v205_v60 = vadd.f32 %v204_v54, %v2669_v15  ;;  %v297_v5 = vsel %vm283_vm5, %v2707_v62, 0.0 }
  0xde   :  { %v293_v58 = vsel %vm283_vm5, %v2701_v57, 0.0  ;;  %v2341_v61 = vpop.f32.mrf.mxu0  ;;  %v261_v6 = vmul.f32 0.01, %v213_v59  ;;  %vm245_vm12 = vcmp.ge.f32.partialorder %v213_v59, 0.0 }
  0xdf   :  { %v294_v63 = vadd.f32 %v293_v58, %v292_v56  ;;  %v216_v0 = vadd.f32 %v2341_v61, %v2669_v15  ;;  %vm243_vm11 = vcmp.ge.f32.partialorder %v205_v60, 0.0  ;;  %v259_v2 = vmul.f32 0.01, %v205_v60 }
  0xe0   :  { %v207_v3 = vpop.f32.mrf.mxu0  ;;  %v2718_v21 = vsel %vm245_vm12, %v213_v59, %v261_v6  ;;  %vm1612_vm12 = vcmask 1040896  }
  0xe1   :  { %v296_v4 = vadd.f32 %v295_v1, %v294_v63  ;;  %v262_v7 = vmul.f32 0.01, %v216_v0  ;;  %v208_v8 = vadd.f32 %v207_v3, %v2669_v15  ;;  %v2715_v16 = vsel %vm243_vm11, %v205_v60, %v259_v2 }
  0xe2   :  { %v2344_v9 = vpop.f32.mrf.mxu0  ;;  %vm246_vm13 = vcmp.ge.f32.partialorder %v216_v0, 0.0  ;;  %v305_v22 = vsel %vm283_vm5, %v2715_v16, 0.0  ;;  %v308_v36 = vsel %vm283_vm5, %v2718_v21, 0.0 }
  0xe3   :  { %v298_v11 = vadd.f32 %v297_v5, %v296_v4  ;;  %vm244_vm14 = vcmp.ge.f32.partialorder %v208_v8, 0.0  ;;  %v260_v17 = vmul.f32 0.01, %v208_v8  ;;  %v2722_v23 = vsel %vm246_vm13, %v216_v0, %v262_v7  ;;  %vm3309_vm13 = vmand %vm1612_vm12, %vm1584_vm10 }
  0xe4   :  { %v220_v18 = vpop.f32.mrf.mxu0  ;;  %v229_v29 = vadd.f32 %v2344_v9, %v2669_v15  ;;  %v310_v39 = vsel %vm283_vm5, %v2722_v23, 0.0 }
  0xe5   :  { %v299_v19 = vrot.slane %v298_v11, 4  ;;  %v221_v20 = vadd.f32 %v220_v18, %v2669_v15  ;;  %v2724_v24 = vsel %vm244_vm14, %v208_v8, %v260_v17  ;;  %vm1776_vm14 = vsmask.f32 7938 }
  0xe6   :  { %v2345_v25 = vpop.f32.mrf.mxu0  ;;  %v306_v28 = vsel %vm283_vm5, %v2724_v24, 0.0  ;;  %v265_v43 = vmul.f32 0.01, %v229_v29  ;;  %vm249_vm2 = vcmp.ge.f32.partialorder %v229_v29, 0.0 }
  0xe7   :  { %v300_v26 = vadd.f32 %v299_v19, %v298_v11  ;;  %vm247_vm15 = vcmp.ge.f32.partialorder %v221_v20, 0.0  ;;  %v307_v30 = vadd.f32 %v306_v28, %v305_v22  ;;  %v263_v33 = vmul.f32 0.01, %v221_v20 }
  0xe8   :  { %v223_v34 = vpop.f32.mrf.mxu0  ;;  %v232_v47 = vadd.f32 %v2345_v25, %v2669_v15  ;;  %v2743_v54 = vsel %vm249_vm2, %v229_v29, %v265_v43 }
  0xe9   :  { %v301_v35 = vrot.slane %v300_v26, 2  ;;  %v224_v37 = vadd.f32 %v223_v34, %v2669_v15  ;;  %v309_v40 = vadd.f32 %v308_v36, %v307_v30  ;;  %v2734_v41 = vsel %vm247_vm15, %v221_v20, %v263_v33 }
  0xea   :  { %v312_v49 = vsel %vm283_vm5, %v2734_v41, 0.0  ;;  %v266_v56 = vmul.f32 0.01, %v232_v47  ;;  %vm250_vm3 = vcmp.ge.f32.partialorder %v232_v47, 0.0  ;;  %v316_v15 = vsel %vm283_vm5, %v2743_v54, 0.0 }
  0xeb   :  { %v302_v42 = vadd.f32 %v301_v35, %v300_v26  ;;  %vm248_vm0 = vcmp.ge.f32.partialorder %v224_v37, 0.0  ;;  %v264_v44 = vmul.f32 0.01, %v224_v37  ;;  %v311_v45 = vadd.f32 %v310_v39, %v309_v40 }
  0xec   :  { %v282_v1 = vsel %vm250_vm3, %v232_v47, %v266_v56 }
  0xed   :  { %v303_v48 = vrot.slane %v302_v42, 1  ;;  %v2739_v50 = vsel %vm248_vm0, %v224_v37, %v264_v44  ;;  %v313_v51 = vadd.f32 %v312_v49, %v311_v45  ;;  %v318_v7 = vsel %vm283_vm5, %v282_v1, 0.0  ;;  %vm3346_vm0 = vmand %vm1612_vm12, %vm1776_vm14 }
  0xee   :  { %v314_v52 = vsel %vm283_vm5, %v2739_v50, 0.0 }
  0xef   :  { %v304_v53 = vadd.f32 %v303_v48, %v302_v42  ;;  %v315_v58 = vadd.f32 %v314_v52, %v313_v51 }
  0xf1   :  { %v327_v59 = vmul.f32 0.015625, %v304_v53  ;;  %v317_v2 = vadd.f32 %v316_v15, %v315_v58 }
  0xf3   :  { %v2748_v60 = vsub.f32 %v2675_v27, %v327_v59  ;;  %v2751_v61 = vsub.f32 %v2679_v32, %v327_v59  ;;  %v2754_v63 = vsub.f32 %v2677_v31, %v327_v59  ;;  %v2757_v0 = vsub.f32 %v2687_v38, %v327_v59 }
  0xf4   :  { %v2760_v3 = vsub.f32 %v2692_v46, %v327_v59  ;;  %v2769_v31 = vsub.f32 %v2701_v57, %v327_v59  ;;  %v2777_v8 = vsub.f32 %v2699_v55, %v327_v59  ;;  %v319_v57 = vadd.f32 %v318_v7, %v317_v2 }
  0xf5   :  { %v345_v4 = vmul.f32 %v2748_v60, %v2748_v60  ;;  %v346_v27 = vmul.f32 %v2751_v61, %v2751_v61  ;;  %v347_v32 = vmul.f32 %v2754_v63, %v2754_v63  ;;  %v348_v38 = vmul.f32 %v2757_v0, %v2757_v0 }
  0xf6   :  { %v349_v9 = vmul.f32 %v2760_v3, %v2760_v3  ;;  %v2783_v18 = vsub.f32 %v2707_v62, %v327_v59  ;;  %v350_v19 = vmul.f32 %v2769_v31, %v2769_v31  ;;  %v320_v22 = vrot.slane %v319_v57, 4 }
  0xf7   :  { %v361_v5 = vsel %vm283_vm5, %v345_v4, 0.0  ;;  %v362_v46 = vsel %vm283_vm5, %v346_v27, 0.0  ;;  %v364_v11 = vsel %vm283_vm5, %v347_v32, 0.0  ;;  %v366_v20 = vsel %vm283_vm5, %v348_v38, 0.0 }
  0xf8   :  { %v363_v6 = vadd.f32 %v362_v46, %v361_v5  ;;  %v351_v55 = vmul.f32 %v2777_v8, %v2777_v8  ;;  %v368_v26 = vsel %vm283_vm5, %v349_v9, 0.0  ;;  %v321_v28 = vadd.f32 %v320_v22, %v319_v57 }
  0xf9   :  { %v352_v30 = vmul.f32 %v2783_v18, %v2783_v18  ;;  %v370_v62 = vsel %vm283_vm5, %v350_v19, 0.0 }
  0xfa   :  { %v365_v17 = vadd.f32 %v364_v11, %v363_v6  ;;  %v322_v33 = vrot.slane %v321_v28, 2  ;;  %v372_v35 = vsel %vm283_vm5, %v351_v55, 0.0 }
  0xfb   :  { %v374_v39 = vsel %vm283_vm5, %v352_v30, 0.0  ;;  %v427_v30 = vsub.s32 1, %v2654_v12 }
  0xfc   :  { %v367_v25 = vadd.f32 %v366_v20, %v365_v17  ;;  %v323_v36 = vadd.f32 %v322_v33, %v321_v28  ;;  %v2845_v33 = vsub.s32 2, %v2654_v12 }
  0xfe   :  { %v369_v29 = vadd.f32 %v368_v26, %v367_v25  ;;  %v324_v40 = vrot.slane %v323_v36, 1 }
 0x100   :  { %v371_v34 = vadd.f32 %v370_v62, %v369_v29  ;;  %v325_v43 = vadd.f32 %v324_v40, %v323_v36 }
 0x102   :  { %v373_v37 = vadd.f32 %v372_v35, %v371_v34  ;;  %v328_v45 = vmul.f32 0.015625, %v325_v43  ;;  %v2850_v35 = vrot.slane %v2664_v14, %v427_v30 }
 0x104   :  { %v375_v42 = vadd.f32 %v374_v39, %v373_v37  ;;  %v2797_v48 = vsub.f32 %v2715_v16, %v328_v45  ;;  %v2800_v49 = vsub.f32 %v2724_v24, %v328_v45  ;;  %v2803_v51 = vsub.f32 %v2718_v21, %v328_v45 }
 0x105   :  { %v2806_v52 = vsub.f32 %v2722_v23, %v328_v45  ;;  %v2809_v56 = vsub.f32 %v2734_v41, %v328_v45  ;;  %v2818_v21 = vsub.f32 %v2739_v50, %v328_v45  ;;  %v2825_v27 = vsub.f32 %v2743_v54, %v328_v45 }
 0x106   :  { %v376_v44 = vrot.slane %v375_v42, 4  ;;  %v353_v58 = vmul.f32 %v2797_v48, %v2797_v48  ;;  %v354_v16 = vmul.f32 %v2800_v49, %v2800_v49  ;;  %v355_v24 = vmul.f32 %v2803_v51, %v2803_v51 }
 0x107   :  { %v356_v23 = vmul.f32 %v2806_v52, %v2806_v52  ;;  %v357_v32 = vmul.f32 %v2809_v56, %v2809_v56  ;;  %v2830_v46 = vsub.f32 %v282_v1, %v328_v45  ;;  %v358_v6 = vmul.f32 %v2818_v21, %v2818_v21 }
 0x108   :  { %v377_v47 = vadd.f32 %v376_v44, %v375_v42  ;;  %v382_v15 = vsel %vm283_vm5, %v353_v58, 0.0  ;;  %v383_v41 = vsel %vm283_vm5, %v354_v16, 0.0  ;;  %v385_v38 = vsel %vm283_vm5, %v355_v24, 0.0 }
 0x109   :  { %v384_v4 = vadd.f32 %v383_v41, %v382_v15  ;;  %v387_v7 = vsel %vm283_vm5, %v356_v23, 0.0  ;;  %v359_v54 = vmul.f32 %v2825_v27, %v2825_v27  ;;  %v389_v57 = vsel %vm283_vm5, %v357_v32, 0.0 }
 0x10a   :  { %v378_v53 = vrot.slane %v377_v47, 2  ;;  %v360_v20 = vmul.f32 %v2830_v46, %v2830_v46  ;;  %v391_v1 = vsel %vm283_vm5, %v358_v6, 0.0  ;;  %v2854_v39 = vrot.slane %v2664_v14, %v2845_v33 }
 0x10b   :  { %v386_v50 = vadd.f32 %v385_v38, %v384_v4  ;;  %v393_v25 = vsel %vm283_vm5, %v359_v54, 0.0 }
 0x10c   :  { %v379_v59 = vadd.f32 %v378_v53, %v377_v47  ;;  %v395_v26 = vsel %vm283_vm5, %v360_v20, 0.0 }
 0x10d   :  { %v388_v11 = vadd.f32 %v387_v7, %v386_v50 }
 0x10e   :  { %v380_v2 = vrot.slane %v379_v59, 1 }
 0x10f   :  { %v390_v19 = vadd.f32 %v389_v57, %v388_v11  ;;  %v2480_v11 = vld [vmem:[%s3380_s3] sm:$0xff]  }
 0x110   :  { %v381_v5 = vadd.f32 %v380_v2, %v379_v59 }
 0x111   :  { %v392_v22 = vadd.f32 %v391_v1, %v390_v19 }
 0x112   :  { %v403_v9 = vmul.f32 0.015625, %v381_v5 }
 0x113   :  { %v394_v55 = vadd.f32 %v393_v25, %v392_v22 }
 0x114   :  { %v405_v17 = vadd.f32 1e-05, %v403_v9 }
 0x115   :  { %v396_v28 = vadd.f32 %v395_v26, %v394_v55 }
 0x116   :  { %2547 = vrsqrt.f32 %v405_v17 }
 0x117   :  { %v397_v29 = vrot.slane %v396_v28, 4 }
 0x119   :  { %v398_v62 = vadd.f32 %v397_v29, %v396_v28 }
 0x11b   :  { %v399_v34 = vrot.slane %v398_v62, 2 }
 0x11d   :  { %v400_v36 = vadd.f32 %v399_v34, %v398_v62 }
 0x11f   :  { %v401_v42 = vrot.slane %v400_v36, 1 }
 0x121   :  { %v402_v58 = vadd.f32 %v401_v42, %v400_v36 }
 0x123   :  { %v2548_v37 = vpop.eup %2547  ;;  %v404_v59 = vmul.f32 0.015625, %v402_v58  ;;  %v2485_v58 = vld [vmem:[%s3380_s3 + $0x28] sm:$0xff]  }
 0x124   :  { %v414_v40 = vmul.f32 %v2548_v37, %v2769_v31  ;;  %v415_v43 = vmul.f32 %v2548_v37, %v2777_v8  ;;  %v416_v44 = vmul.f32 %v2548_v37, %v2783_v18  ;;  %v413_v45 = vmul.f32 %v2548_v37, %v2760_v3 }
 0x125   :  { %v411_v47 = vmul.f32 %v2548_v37, %v2754_v63  ;;  %v412_v53 = vmul.f32 %v2548_v37, %v2757_v0  ;;  %v409_v0 = vmul.f32 %v2548_v37, %v2748_v60  ;;  %v410_v23 = vmul.f32 %v2548_v37, %v2751_v61 }
 0x126   :  { %v435_v16 = vmul.f32 %v2850_v35, %v415_v43  ;;  %v436_v24 = vmul.f32 %v2850_v35, %v416_v44  ;;  %v434_v14 = vmul.f32 %v2850_v35, %v414_v40  ;;  %v433_v31 = vmul.f32 %v2850_v35, %v413_v45  ;;  %v2482_v43 = vld [vmem:[%s3380_s3 + $0x10] sm:$0xff]  }
 0x127   :  { %v431_v3 = vmul.f32 %v2850_v35, %v411_v47  ;;  %v432_v63 = vmul.f32 %v2850_v35, %v412_v53  ;;  %v406_v15 = vadd.f32 1e-05, %v404_v59  ;;  %v429_v50 = vmul.f32 %v2850_v35, %v409_v0  ;;  %v2483_v53 = vld [vmem:[%s3380_s3 + $0x18] sm:$0xff]  }
 0x128   :  { %v455_v8 = vadd.f32 %v2854_v39, %v435_v16  ;;  %v456_v18 = vadd.f32 %v2854_v39, %v436_v24  ;;  %v453_v2 = vadd.f32 %v2854_v39, %v433_v31  ;;  %v454_v4 = vadd.f32 %v2854_v39, %v434_v14  ;;  %v2486_v16 = vld [vmem:[%s3380_s3 + $0x30] sm:$0xff]   ;;  %v2487_v24 = vld [vmem:[%s3380_s3 + $0x38] sm:$0xff]   ;;  %v2488_v14 = vld [vmem:[%s3380_s3 + $0x40] sm:$0xff]  }
 0x129   :  { %2549 = vrsqrt.f32 %v406_v15  ;;  %v451_v32 = vadd.f32 %v2854_v39, %v431_v3  ;;  %v452_v5 = vadd.f32 %v2854_v39, %v432_v63  ;;  %v430_v60 = vmul.f32 %v2850_v35, %v410_v23  ;;  %v2489_v31 = vld [vmem:[%s3382_s4 + $0xf8] sm:$0xff]   ;;  %v2491_v63 = vld [vmem:[%s3382_s4 + $0xf0] sm:$0xff]  }
 0x12a   :  { %v487_v41 = vpack.c.bf16 %v456_v18, %v455_v8  ;;  %v486_v38 = vpack.c.bf16 %v454_v4, %v453_v2  ;;  %v449_v6 = vadd.f32 %v2854_v39, %v429_v50  ;;  %v2490_v59 = vld [vmem:[%s3382_s4 + $0xb8] sm:$0xff]   ;;  %v2493_v23 = vld [vmem:[%s3382_s4 + $0xb0] sm:$0xff]  }
 0x12b   :  { %v485_v61 = vpack.c.bf16 %v452_v5, %v451_v32  ;;  %v450_v7 = vadd.f32 %v2854_v39, %v430_v60  ;;  %v2492_v0 = vld [vmem:[%s3382_s4 + $0x78] sm:$0xff]   ;;  %v2496_v2 = vld [vmem:[%s3382_s4 + $0x70] sm:$0xff]   ;;  %v2499_v60 = vld [vmem:[%s3382_s4 + $0xe0] sm:$0xff]  }
 0x12c   :  { %2347 = vmatpush3.bf16.msra.mxu1 %v487_v41  ;;  %v2494_v15 = vld [vmem:[%s3382_s4 + $0x38] sm:$0xff]   ;;  %v2495_v41 = vld [vmem:[%s3382_s4 + $0xe8] sm:$0xff]   ;;  %v2498_v5 = vld [vmem:[%s3382_s4 + $0x30] sm:$0xff]  }
 0x12d   :  { %2348 = vmatprep.subr.bf16.mxu1 %v2555_v10  ;;  %v484_v9 = vpack.c.bf16 %v450_v7, %v449_v6 }
 0x130   :  { %2349 = vmatpush3.bf16.msra.mxu1 %v486_v38  ;;  %v2497_v38 = vld [vmem:[%s3382_s4 + $0xa8] sm:$0xff]  }
 0x131   :  { %2350 = vmatprep.subr.bf16.mxu1 %v2555_v10 }
 0x134   :  { %2351 = vmatpush3.bf16.msra.mxu1 %v485_v61  ;;  %v2501_v61 = vld [vmem:[%s3382_s4 + $0x68] sm:$0xff]  }
 0x135   :  { %2352 = vmatprep.subr.bf16.mxu1 %v2555_v10 }
 0x136   :  { %v2550_v54 = vpop.eup %2549 }
 0x137   :  { %v422_v57 = vmul.f32 %v2550_v54, %v2818_v21  ;;  %v423_v17 = vmul.f32 %v2550_v54, %v2825_v27  ;;  %v424_v19 = vmul.f32 %v2550_v54, %v2830_v46  ;;  %v421_v20 = vmul.f32 %v2550_v54, %v2809_v56 }
 0x138   :  { %2353 = vmatpush3.bf16.msra.mxu1 %v484_v9  ;;  %v419_v1 = vmul.f32 %v2550_v54, %v2803_v51  ;;  %v420_v22 = vmul.f32 %v2550_v54, %v2806_v52  ;;  %v2481_v51 = vld [vmem:[%s3380_s3 + $0x8] sm:$0xff]   ;;  %v417_v46 = vmul.f32 %v2550_v54, %v2797_v48  ;;  %v418_v28 = vmul.f32 %v2550_v54, %v2800_v49  ;;  %v2500_v9 = vld [vmem:[%s3382_s4 + $0xa0] sm:$0xff]  }
 0x139   :  { %v442_v25 = vmul.f32 %v2850_v35, %v422_v57  ;;  %v443_v55 = vmul.f32 %v2850_v35, %v423_v17  ;;  %v444_v26 = vmul.f32 %v2850_v35, %v424_v19  ;;  %v441_v21 = vmul.f32 %v2850_v35, %v421_v20  ;;  %2255 = vmatprep.subr.bf16.mxu1 %v2492_v0  ;;  %v2503_v57 = vld [vmem:[%s3382_s4 + $0xd8] sm:$0xff]  }
 0x13a   :  { %v439_v52 = vmul.f32 %v2850_v35, %v419_v1  ;;  %v440_v36 = vmul.f32 %v2850_v35, %v420_v22  ;;  %v437_v37 = vmul.f32 %v2850_v35, %v417_v46  ;;  %v438_v49 = vmul.f32 %v2850_v35, %v418_v28 }
 0x13b   :  { %2355 = vmatmul.mubr.msk.bf16.vlgmr.msra.gmra.mxu1 %vm283_vm5, %v2480_v11  ;;  %v463_v27 = vadd.f32 %v2854_v39, %v443_v55  ;;  %v464_v56 = vadd.f32 %v2854_v39, %v444_v26  ;;  %v461_v62 = vadd.f32 %v2854_v39, %v441_v21  ;;  %v462_v34 = vadd.f32 %v2854_v39, %v442_v25 }
 0x13c   :  { %2358 = vmatprep.mubr.msk.bf16.mxu1 %vm2556_vm1, %v2555_v10  ;;  %v459_v42 = vadd.f32 %v2854_v39, %v439_v52  ;;  %v460_v48 = vadd.f32 %v2854_v39, %v440_v36  ;;  %v457_v45 = vadd.f32 %v2854_v39, %v437_v37  ;;  %v458_v47 = vadd.f32 %v2854_v39, %v438_v49  ;;  %v2484_v39 = vld [vmem:[%s3380_s3 + $0x20] sm:$0xff]  }
 0x13d   :  { %v491_v29 = vpack.c.bf16 %v464_v56, %v463_v27  ;;  %v490_v40 = vpack.c.bf16 %v462_v34, %v461_v62  ;;  %2256 = vmatpush3.bf16.msra.mxu1 %v2494_v15  ;;  %v2505_v15 = vld [vmem:[%s3382_s4 + $0xd0] sm:$0xff]  }
 0x13e   :  { %v489_v44 = vpack.c.bf16 %v460_v48, %v459_v42  ;;  %v488_v35 = vpack.c.bf16 %v458_v47, %v457_v45  ;;  %2257 = vmatprep.subr.bf16.mxu1 %v2496_v2 }
 0x13f   :  { %2391 = vmatpush3.bf16.msra.mxu0 %v491_v29 }
 0x140   :  { %2392 = vmatprep.subr.bf16.mxu0 %v2555_v10 }
 0x141   :  { %2258 = vmatpush3.bf16.msra.mxu1 %v2498_v5  ;;  %v2506_v5 = vld [vmem:[%s3382_s4 + $0x90] sm:$0xff]  }
 0x142   :  { %2259 = vmatprep.subr.bf16.mxu1 %v2501_v61  ;;  %v2509_v61 = vld [vmem:[%s3382_s4 + $0xc8] sm:$0xff]  }
 0x143   :  { %2359 = vmatmul.mubr.msk.bf16.gmra.mxu1 %vm283_vm5, %v2481_v51  ;;  %2393 = vmatpush3.bf16.msra.mxu0 %v490_v40 }
 0x144   :  { %2362 = vmatprep.mubr.msk.bf16.mxu1 %vm2556_vm1, %v2555_v10  ;;  %2394 = vmatprep.subr.bf16.mxu0 %v2555_v10 }
 0x147   :  { %2395 = vmatpush3.bf16.msra.mxu0 %v489_v44 }
 0x148   :  { %2396 = vmatprep.subr.bf16.mxu0 %v2555_v10 }
 0x14b   :  { %2363 = vmatmul.mubr.msk.bf16.gmra.mxu1 %vm283_vm5, %v2482_v43  ;;  %2397 = vmatpush3.bf16.msra.mxu0 %v488_v35 }
 0x14c   :  { %2366 = vmatprep.mubr.msk.bf16.mxu1 %vm2556_vm1, %v2555_v10  ;;  %2283 = vmatprep.subr.bf16.mxu0 %v2489_v31 }
 0x14e   :  { %2399 = vmatmul.mubr.msk.bf16.vlgmr.msra.gmra.mxu0 %vm283_vm5, %v2480_v11  ;;  %v2502_v11 = vld [vmem:[%s3382_s4 + $0x28] sm:$0xff]  }
 0x14f   :  { %2402 = vmatprep.mubr.msk.bf16.mxu0 %vm2556_vm1, %v2555_v10  ;;  %2284 = vmatpush3.bf16.msra.mxu0 %v2490_v59 }
 0x150   :  { %2285 = vmatprep.subr.bf16.mxu0 %v2491_v63  ;;  %2260 = vmatpush3.bf16.msra.mxu1 %v2502_v11 }
 0x153   :  { %2367 = vmatmul.mubr.msk.bf16.gmra.mxu1 %vm283_vm5, %v2483_v53  ;;  %2286 = vmatpush3.bf16.msra.mxu0 %v2493_v23  ;;  %v2504_v23 = vld [vmem:[%s3382_s4 + $0x98] sm:$0xff]  }
 0x154   :  { %2370 = vmatprep.mubr.msk.bf16.mxu1 %vm2556_vm1, %v2555_v10  ;;  %2287 = vmatprep.subr.bf16.mxu0 %v2495_v41 }
 0x156   :  { %2403 = vmatmul.mubr.msk.bf16.gmra.mxu0 %vm283_vm5, %v2481_v51 }
 0x157   :  { %2406 = vmatprep.mubr.msk.bf16.mxu0 %vm2556_vm1, %v2555_v10  ;;  %2288 = vmatpush3.bf16.msra.mxu0 %v2497_v38 }
 0x158   :  { %2289 = vmatprep.subr.bf16.mxu0 %v2499_v60  ;;  %v2508_v60 = vld [vmem:[%s3382_s4 + $0x20] sm:$0xff]  }
 0x15b   :  { %2371 = vmatmul.mubr.msk.bf16.gmra.mxu1 %vm283_vm5, %v2484_v39  ;;  %2290 = vmatpush3.bf16.msra.mxu0 %v2500_v9  ;;  %v2510_v9 = vld [vmem:[%s3382_s4 + $0x88] sm:$0xff]  }
 0x15c   :  { %2374 = vmatprep.mubr.msk.bf16.mxu1 %vm2556_vm1, %v2555_v10  ;;  %2291 = vmatprep.subr.bf16.mxu0 %v2503_v57 }
 0x15e   :  { %2407 = vmatmul.mubr.msk.bf16.gmra.mxu0 %vm283_vm5, %v2482_v43 }
 0x15f   :  { %2410 = vmatprep.mubr.msk.bf16.mxu0 %vm2556_vm1, %v2555_v10  ;;  %2292 = vmatpush3.bf16.msra.mxu0 %v2504_v23 }
 0x160   :  { %2293 = vmatprep.subr.bf16.mxu0 %v2505_v15 }
 0x163   :  { %2375 = vmatmul.mubr.msk.bf16.gmra.mxu1 %vm283_vm5, %v2485_v58  ;;  %2294 = vmatpush3.bf16.msra.mxu0 %v2506_v5 }
 0x164   :  { %2378 = vmatprep.mubr.msk.bf16.mxu1 %vm2556_vm1, %v2555_v10  ;;  %2295 = vmatprep.subr.bf16.mxu0 %v2509_v61 }
 0x166   :  { %2411 = vmatmul.mubr.msk.bf16.gmra.mxu0 %vm283_vm5, %v2483_v53 }
 0x167   :  { %2414 = vmatprep.mubr.msk.bf16.mxu0 %vm2556_vm1, %v2555_v10  ;;  %2296 = vmatpush3.bf16.msra.mxu0 %v2510_v9 }
 0x16b   :  { %2379 = vmatmul.mubr.msk.bf16.gmra.mxu1 %vm283_vm5, %v2486_v16 }
 0x16c   :  { %2382 = vmatprep.mubr.msk.bf16.mxu1 %vm2556_vm1, %v2555_v10 }
 0x16e   :  { %2415 = vmatmul.mubr.msk.bf16.gmra.mxu0 %vm283_vm5, %v2484_v39 }
 0x16f   :  { %2418 = vmatprep.mubr.msk.bf16.mxu0 %vm2556_vm1, %v2555_v10 }
 0x173   :  { %2383 = vmatmul.mubr.msk.bf16.gmra.mxu1 %vm283_vm5, %v2487_v24 }
 0x174   :  { %2386 = vmatprep.mubr.msk.bf16.mxu1 %vm2556_vm1, %v2555_v10 }
 0x176   :  { %2419 = vmatmul.mubr.msk.bf16.gmra.mxu0 %vm283_vm5, %v2485_v58 }
 0x177   :  { %2422 = vmatprep.mubr.msk.bf16.mxu0 %vm2556_vm1, %v2555_v10 }
 0x17b   :  { %2387 = vmatmul.mubr.msk.bf16.gmra.mxu1 %vm283_vm5, %v2488_v14 }
 0x17e   :  { %2423 = vmatmul.mubr.msk.bf16.gmra.mxu0 %vm283_vm5, %v2486_v16 }
 0x17f   :  { %2426 = vmatprep.mubr.msk.bf16.mxu0 %vm2556_vm1, %v2555_v10 }
 0x186   :  { %2427 = vmatmul.mubr.msk.bf16.gmra.mxu0 %vm283_vm5, %v2487_v24 }
 0x187   :  { %2430 = vmatprep.mubr.msk.bf16.mxu0 %vm2556_vm1, %v2555_v10 }
 0x18e   :  { %2431 = vmatmul.mubr.msk.bf16.gmra.mxu0 %vm283_vm5, %v2488_v14 }
 0x1fb   :  { %v598_v8 = vpop.f32.mrf.mxu1 }
 0x1fc   :  { %v2183_v18 = vpack.c.bf16 %v598_v8, %v598_v8 }
 0x1fd   :  { %v2356_v3 = vpop.f32.mrf.mxu1 }
 0x1fe   :  { %686 = vst.msk [vmem:[#allocation2] sm:$0xf] %vm685_vm4, %v2183_v18 }
 0x1ff   :  { %v601_v4 = vpop.f32.mrf.mxu1 }
 0x200   :  { %v2184_v32 = vpack.c.bf16 %v601_v4, %v601_v4 }
 0x201   :  { %v2357_v50 = vpop.f32.mrf.mxu1 }
 0x202   :  { %687 = vst.msk [vmem:[#allocation2 + $0x14] sm:$0xf] %vm685_vm4, %v2184_v32  ;;  %v2507_v50 = vld [vmem:[%s3382_s4 + $0x60] sm:$0xff]  }
 0x203   :  { %v606_v6 = vpop.f32.mrf.mxu1  ;;  %2261 = vmatprep.subr.bf16.mxu1 %v2507_v50 }
 0x204   :  { %v2185_v7 = vpack.c.bf16 %v606_v6, %v606_v6  ;;  %2262 = vmatpush3.bf16.msra.mxu1 %v2508_v60  ;;  %v2528_v60 = vld [vmem:[%s3382_s4] sm:$0xff]  }
 0x205   :  { %v2360_v54 = vpop.f32.mrf.mxu1 }
 0x206   :  { %693 = vrot.lane.b32.xlu0 %v2185_v7, %s2557_s0  ;;  %v2511_v54 = vld [vmem:[%s3382_s4 + $0xc0] sm:$0xff]  }
 0x207   :  { %v609_v17 = vpop.f32.mrf.mxu1  ;;  %2297 = vmatprep.subr.bf16.mxu0 %v2511_v54 }
 0x208   :  { %v2186_v19 = vpack.c.bf16 %v609_v17, %v609_v17 }
 0x209   :  { %v2361_v20 = vpop.f32.mrf.mxu1 }
 0x20a   :  { %695 = vrot.lane.b32.xlu1 %v2186_v19, %s2557_s0 }
 0x20b   :  { %v614_v1 = vpop.f32.mrf.mxu1 }
 0x20c   :  { %v2187_v22 = vpack.c.bf16 %v614_v1, %v614_v1 }
 0x20d   :  { %v2364_v25 = vpop.f32.mrf.mxu1 }
 0x20e   :  { %709 = vst.msk [vmem:[#allocation2 + $0x4] sm:$0xf] %vm685_vm4, %v2187_v22  ;;  %v811_v21 = vpop.f32.mrf.mxu0  ;;  %v2512_v22 = vld [vmem:[%s3382_s4 + $0x80] sm:$0xff]  }
 0x20f   :  { %v617_v55 = vpop.f32.mrf.mxu1  ;;  %v2201_v56 = vpack.c.bf16 %v811_v21, %v811_v21  ;;  %2298 = vmatpush3.bf16.msra.mxu0 %v2512_v22 }
 0x210   :  { %v2188_v26 = vpack.c.bf16 %v617_v55, %v617_v55  ;;  %v2400_v51 = vpop.f32.mrf.mxu0 }
 0x211   :  { %v2365_v27 = vpop.f32.mrf.mxu1  ;;  %898 = vst.msk [vmem:[#allocation2 + $0x28] sm:$0xf] %vm685_vm4, %v2201_v56 }
 0x212   :  { %710 = vst.msk [vmem:[#allocation2 + $0x18] sm:$0xf] %vm685_vm4, %v2188_v26  ;;  %v814_v46 = vpop.f32.mrf.mxu0  ;;  %v2516_v27 = vld [vmem:[%s3382_s4 + $0x58] sm:$0xff]  }
 0x213   :  { %v3038_v52 = vpop.f32.mrf.mxu1  ;;  %v2202_v29 = vpack.c.bf16 %v814_v46, %v814_v46  ;;  %2263 = vmatprep.subr.bf16.mxu1 %v2516_v27  ;;  %v2523_v27 = vld [vmem:[%s3382_s4 + $0x110] sm:$0xff]  }
 0x214   :  { %v2401_v62 = vpop.f32.mrf.mxu0  ;;  %v2189_v5 = vpack.c.bf16 %v3038_v52, %v3038_v52 }
 0x215   :  { %v2368_v28 = vpop.f32.mrf.mxu1  ;;  %899 = vst.msk [vmem:[#allocation2 + $0x3c] sm:$0xf] %vm685_vm4, %v2202_v29 }
 0x216   :  { %v3044_v36 = vpop.f32.mrf.mxu0 }
 0x217   :  { %v3041_v34 = vpop.f32.mrf.mxu1 }
 0x218   :  { %v2404_v40 = vpop.f32.mrf.mxu0  ;;  %v2190_v9 = vpack.c.bf16 %v3041_v34, %v3041_v34 }
 0x219   :  { %v2369_v37 = vpop.f32.mrf.mxu1 }
 0x21a   :  { %v3046_v49 = vpop.f32.mrf.mxu0 }
 0x21b   :  { %v630_v42 = vpop.f32.mrf.mxu1 }
 0x21c   :  { %v2191_v48 = vpack.c.bf16 %v630_v42, %v630_v42  ;;  %v2405_v44 = vpop.f32.mrf.mxu0 }
 0x21d   :  { %v2372_v43 = vpop.f32.mrf.mxu1 }
 0x21e   :  { %731 = vst.msk [vmem:[#allocation2 + $0x8] sm:$0xf] %vm685_vm4, %v2191_v48  ;;  %v827_v35 = vpop.f32.mrf.mxu0  ;;  %v2517_v43 = vld [vmem:[%s3382_s4 + $0x18] sm:$0xff]  }
 0x21f   :  { %v633_v45 = vpop.f32.mrf.mxu1  ;;  %v2205_v39 = vpack.c.bf16 %v827_v35, %v827_v35  ;;  %2264 = vmatpush3.bf16.msra.mxu1 %v2517_v43 }
 0x220   :  { %v2192_v47 = vpack.c.bf16 %v633_v45, %v633_v45  ;;  %v2408_v58 = vpop.f32.mrf.mxu0 }
 0x221   :  { %v2373_v53 = vpop.f32.mrf.mxu1  ;;  %920 = vst.msk [vmem:[#allocation2 + $0x2c] sm:$0xf] %vm685_vm4, %v2205_v39 }
 0x222   :  { %732 = vst.msk [vmem:[#allocation2 + $0x1c] sm:$0xf] %vm685_vm4, %v2192_v47  ;;  %v830_v14 = vpop.f32.mrf.mxu0  ;;  %v2518_v53 = vld [vmem:[%s3382_s4 + $0x50] sm:$0xff]  }
 0x223   :  { %v638_v16 = vpop.f32.mrf.mxu1  ;;  %v2206_v59 = vpack.c.bf16 %v830_v14, %v830_v14  ;;  %2265 = vmatprep.subr.bf16.mxu1 %v2518_v53  ;;  %v2519_v14 = vld [vmem:[%s3382_s4 + $0x10] sm:$0xff]  }
 0x224   :  { %v2193_v24 = vpack.c.bf16 %v638_v16, %v638_v16  ;;  %v2409_v8 = vpop.f32.mrf.mxu0  ;;  %v3106_v16 = vld [vmem:[%s3382_s4 + $0x118] sm:$0xff]   ;;  %2266 = vmatpush3.bf16.msra.mxu1 %v2519_v14  ;;  %v2541_v14 = vld [vmem:[%s3383_s8 + $0x28] sm:$0xff]  }
 0x225   :  { %v2376_v31 = vpop.f32.mrf.mxu1  ;;  %921 = vst.msk [vmem:[#allocation2 + $0x40] sm:$0xf] %vm685_vm4, %v2206_v59  ;;  %2434 = vmatprep.subr.bf16.mxu0 %v3106_v16 }
 0x226   :  { %738 = vrot.lane.b32.xlu0 %v2193_v24, %s2557_s0  ;;  %v3053_v63 = vpop.f32.mrf.mxu0 }
 0x227   :  { %v641_v18 = vpop.f32.mrf.mxu1 }
 0x228   :  { %v2194_v3 = vpack.c.bf16 %v641_v18, %v641_v18  ;;  %v2412_v41 = vpop.f32.mrf.mxu0  ;;  %v2521_v18 = vld [vmem:[%s3382_s4 + $0x48] sm:$0xff]  }
 0x229   :  { %v2377_v0 = vpop.f32.mrf.mxu1  ;;  %2267 = vmatprep.subr.bf16.mxu1 %v2521_v18  ;;  %v2522_v41 = vld [vmem:[%s3382_s4 + $0x8] sm:$0xff]  }
 0x22a   :  { %740 = vrot.lane.b32.xlu0 %v2194_v3, %s2557_s0  ;;  %v3062_v32 = vpop.f32.mrf.mxu0  ;;  %2268 = vmatpush3.bf16.msra.mxu1 %v2522_v41  ;;  %v2545_v18 = vld [vmem:[%s3383_s8 + $0x8] sm:$0xff]  }
 0x22b   :  { %v646_v2 = vpop.f32.mrf.mxu1  ;;  %v2208_v34 = vpack.c.bf16 %v3062_v32, %v3062_v32 }
 0x22c   :  { %v2195_v4 = vpack.c.bf16 %v646_v2, %v646_v2  ;;  %v2413_v6 = vpop.f32.mrf.mxu0 }
 0x22d   :  { %v2380_v38 = vpop.f32.mrf.mxu1 }
 0x22e   :  { %753 = vst.msk [vmem:[#allocation2 + $0xc] sm:$0xf] %vm685_vm4, %v2195_v4  ;;  %v843_v57 = vpop.f32.mrf.mxu0  ;;  %v2526_v4 = vld [vmem:[%s3382_s4 + $0x40] sm:$0xff]  }
 0x22f   :  { %v649_v7 = vpop.f32.mrf.mxu1  ;;  %v2209_v19 = vpack.c.bf16 %v843_v57, %v843_v57  ;;  %2269 = vmatprep.subr.bf16.mxu1 %v2526_v4  ;;  %v2204_v57 = vpack.c.bf16 %v3046_v49, %v3046_v49 }
 0x230   :  { %v2196_v11 = vpack.c.bf16 %v649_v7, %v649_v7  ;;  %v2416_v20 = vpop.f32.mrf.mxu0  ;;  %2270 = vmatpush3.bf16.msra.mxu1 %v2528_v60  ;;  %v2203_v7 = vpack.c.bf16 %v3044_v36, %v3044_v36  ;;  %v2207_v36 = vpack.c.bf16 %v3053_v63, %v3053_v63 }
 0x231   :  { %v2381_v17 = vpop.f32.mrf.mxu1  ;;  %942 = vst.msk [vmem:[#allocation2 + $0x30] sm:$0xf] %vm685_vm4, %v2209_v19  ;;  %2446 = vmatprep.subr.bf16.mxu1 %v2555_v10 }
 0x232   :  { %754 = vst.msk [vmem:[#allocation2 + $0x20] sm:$0xf] %vm685_vm4, %v2196_v11  ;;  %v846_v55 = vpop.f32.mrf.mxu0 }
 0x233   :  { %v654_v1 = vpop.f32.mrf.mxu1  ;;  %v2210_v21 = vpack.c.bf16 %v846_v55, %v846_v55 }
 0x234   :  { %v2197_v25 = vpack.c.bf16 %v654_v1, %v654_v1  ;;  %v2417_v56 = vpop.f32.mrf.mxu0 }
 0x235   :  { %v2384_v26 = vpop.f32.mrf.mxu1  ;;  %943 = vst.msk [vmem:[#allocation2 + $0x44] sm:$0xf] %vm685_vm4, %v2210_v21  ;;  %v2529_v56 = vld [vmem:[%s3382_s4 + $0x108] sm:$0xff]  }
 0x236   :  { %760 = vrot.lane.b32.xlu1 %v2197_v25, %s2557_s0  ;;  %v851_v28 = vpop.f32.mrf.mxu0 }
 0x237   :  { %v657_v51 = vpop.f32.mrf.mxu1  ;;  %v2211_v62 = vpack.c.bf16 %v851_v28, %v851_v28 }
 0x238   :  { %v2198_v46 = vpack.c.bf16 %v657_v51, %v657_v51  ;;  %v2420_v37 = vpop.f32.mrf.mxu0  ;;  %v2533_v51 = vld [vmem:[%s3382_s4 + $0x100] sm:$0xff]  }
 0x239   :  { %v2385_v29 = vpop.f32.mrf.mxu1  ;;  %949 = vrot.lane.b32.xlu0 %v2211_v62, %s2557_s0 }
 0x23a   :  { %762 = vrot.lane.b32.xlu1 %v2198_v46, %s2557_s0  ;;  %v854_v40 = vpop.f32.mrf.mxu0 }
 0x23b   :  { %v2212_v42 = vpack.c.bf16 %v854_v40, %v854_v40  ;;  %v662_v47 = vpop.f32.mrf.mxu1 }
 0x23c   :  { %v2421_v48 = vpop.f32.mrf.mxu0  ;;  %v2199_v8 = vpack.c.bf16 %v662_v47, %v662_v47 }
 0x23d   :  { %v2388_v39 = vpop.f32.mrf.mxu1 }
 0x23e   :  { %951 = vrot.lane.b32.xlu1 %v2212_v42, %s2557_s0  ;;  %v859_v44 = vpop.f32.mrf.mxu0  ;;  %775 = vst.msk [vmem:[#allocation2 + $0x10] sm:$0xf] %vm685_vm4, %v2199_v8  ;;  %v2544_v8 = vld [vmem:[%s3383_s8 + $0x10] sm:$0xff]  }
 0x23f   :  { %v2213_v45 = vpack.c.bf16 %v859_v44, %v859_v44  ;;  %v665_v31 = vpop.f32.mrf.mxu1 }
 0x240   :  { %v2424_v35 = vpop.f32.mrf.mxu0  ;;  %v2200_v23 = vpack.c.bf16 %v665_v31, %v665_v31  ;;  %v2542_v31 = vld [vmem:[%s3383_s8 + $0x20] sm:$0xff]  }
 0x241   :  { %964 = vst.msk [vmem:[#allocation2 + $0x34] sm:$0xf] %vm685_vm4, %v2213_v45  ;;  %v2389_v3 = vpop.f32.mrf.mxu1 }
 0x242   :  { %v862_v58 = vpop.f32.mrf.mxu0  ;;  %776 = vst.msk [vmem:[#allocation2 + $0x24] sm:$0xf] %vm685_vm4, %v2200_v23  ;;  %v2546_v3 = vld [vmem:[%s3383_s8] sm:$0xff]  }
 0x243   :  { %v2214_v24 = vpack.c.bf16 %v862_v58, %v862_v58 }
 0x244   :  { %v2425_v59 = vpop.f32.mrf.mxu0 }
 0x245   :  { %965 = vst.msk [vmem:[#allocation2 + $0x48] sm:$0xf] %vm685_vm4, %v2214_v24  ;;  %v2540_v24 = vld [vmem:[%s3383_s8 + $0x30] sm:$0xff]   ;;  %v2543_v59 = vld [vmem:[%s3383_s8 + $0x18] sm:$0xff]  }
 0x246   :  { %v867_v0 = vpop.f32.mrf.mxu0 }
 0x247   :  { %v2215_v15 = vpack.c.bf16 %v867_v0, %v867_v0  ;;  %v1580_v0 = vld [vmem:[%s3384_s7] sm:$0x7] }
 0x248   :  { %v2428_v2 = vpop.f32.mrf.mxu0  ;;  %v1917_v23 = vrot.slane %v1580_v0, %v2845_v33 }
 0x249   :  { %971 = vrot.lane.b32.xlu0 %v2215_v15, %s2557_s0  ;;  %v2534_v40 = vld [vmem:[#allocation2 + $0x10] ss:$20 sps:$4 sm:$0xff]  }
 0x24a   :  { %v870_v38 = vpop.f32.mrf.mxu0  ;;  %v1918_v15 = vpack.c.bf16 %v1917_v23, %v1917_v23 }
 0x24b   :  { %v2216_v50 = vpack.c.bf16 %v870_v38, %v870_v38 }
 0x24c   :  { %v2429_v61 = vpop.f32.mrf.mxu0 }
 0x24d   :  { %716 = vrot.lane.b32.xlu0 %v2189_v5, %s2557_s0  ;;  %973 = vrot.lane.b32.xlu1 %v2216_v50, %s2557_s0 }
 0x24e   :  { %v875_v6 = vpop.f32.mrf.mxu0 }
 0x24f   :  { %v2217_v52 = vpack.c.bf16 %v875_v6, %v875_v6 }
 0x250   :  { %v2432_v11 = vpop.f32.mrf.mxu0 }
 0x251   :  { %905 = vrot.lane.b32.xlu0 %v2203_v7, %s2557_s0  ;;  %718 = vrot.lane.b32.xlu1 %v2190_v9, %s2557_s0  ;;  %986 = vst.msk [vmem:[#allocation2 + $0x38] sm:$0xf] %vm685_vm4, %v2217_v52 }
 0x252   :  { %v878_v54 = vpop.f32.mrf.mxu0 }
 0x253   :  { %v2218_v17 = vpack.c.bf16 %v878_v54, %v878_v54 }
 0x254   :  { %v2433_v19 = vpop.f32.mrf.mxu0 }
 0x255   :  { %927 = vrot.lane.b32.xlu0 %v2207_v36, %s2557_s0  ;;  %907 = vrot.lane.b32.xlu1 %v2204_v57, %s2557_s0  ;;  %987 = vst.msk [vmem:[#allocation2 + $0x4c] sm:$0xf] %vm685_vm4, %v2218_v17 }
 0x259   :  { %929 = vrot.lane.b32.xlu1 %v2208_v34, %s2557_s0 }
 0x25c   :  { %v2535_v53 = vld [vmem:[#allocation2 + $0x38] ss:$20 sps:$4 sm:$0xff]  }
 0x278   :  { %v694_v20 = vpop.permute.xlu0 %693 }
 0x279   :  { %700 = vst.msk [vmem:[#allocation2] sm:$0xf] %vm699_vm6, %v694_v20 }
 0x27c   :  { %v696_v49 = vpop.permute.xlu1 %695 }
 0x27d   :  { %701 = vst.msk [vmem:[#allocation2 + $0x14] sm:$0xf] %vm699_vm6, %v696_v49 }
 0x284   :  { %v2530_v47 = vld [vmem:[#allocation2] ss:$20 sps:$4 sm:$0xff]  }
 0x298   :  { %v739_v63 = vpop.permute.xlu0 %738 }
 0x299   :  { %744 = vst.msk [vmem:[#allocation2 + $0x8] sm:$0xf] %vm699_vm6, %v739_v63 }
 0x29c   :  { %v741_v1 = vpop.permute.xlu0 %740 }
 0x29d   :  { %745 = vst.msk [vmem:[#allocation2 + $0x1c] sm:$0xf] %vm699_vm6, %v741_v1 }
 0x2a4   :  { %v2513_v26 = vld [vmem:[#allocation2 + $0x8] ss:$20 sps:$4 sm:$0xff]  }
 0x2a8   :  { %v761_v22 = vpop.permute.xlu1 %760 }
 0x2a9   :  { %766 = vst.msk [vmem:[#allocation2 + $0xc] sm:$0xf] %vm699_vm6, %v761_v22 }
 0x2ab   :  { %v950_v32 = vpop.permute.xlu0 %949 }
 0x2ac   :  { %v763_v25 = vpop.permute.xlu1 %762  ;;  %955 = vst.msk [vmem:[#allocation2 + $0x30] sm:$0xf] %vm699_vm6, %v950_v32 }
 0x2ad   :  { %767 = vst.msk [vmem:[#allocation2 + $0x20] sm:$0xf] %vm699_vm6, %v763_v25 }
 0x2b0   :  { %v952_v55 = vpop.permute.xlu1 %951 }
 0x2b1   :  { %956 = vst.msk [vmem:[#allocation2 + $0x44] sm:$0xf] %vm699_vm6, %v952_v55 }
 0x2b4   :  { %v2515_v21 = vld [vmem:[#allocation2 + $0xc] ss:$20 sps:$4 sm:$0xff]  }
 0x2b5   :  { %1429 = vmatprep.mubr.bf16.mxu0 %v2515_v21 }
 0x2b6   :  { %1430 = vmatmul.mubr.bf16.vlgmr.msra.gmra.mxu0 %v2513_v26 }
 0x2b7   :  { %2435 = vmatpush3.bf16.msra.mxu0 %v3106_v16  ;;  %v2539_v16 = vld [vmem:[%s3383_s8 + $0x38] sm:$0xff]  }
 0x2b8   :  { %2436 = vmatprep.subr.bf16.mxu0 %v2523_v27  ;;  %v2527_v44 = vld [vmem:[#allocation2 + $0x30] ss:$20 sps:$4 sm:$0xff]  }
 0x2bb   :  { %2437 = vmatpush3.bf16.msra.mxu0 %v2523_v27  ;;  %v972_v46 = vpop.permute.xlu0 %971 }
 0x2bc   :  { %2438 = vmatprep.subr.bf16.mxu0 %v2529_v56  ;;  %977 = vst.msk [vmem:[#allocation2 + $0x34] sm:$0xf] %vm699_vm6, %v972_v46 }
 0x2bf   :  { %2439 = vmatpush3.bf16.msra.mxu0 %v2529_v56  ;;  %v717_v28 = vpop.permute.xlu0 %716  ;;  %v974_v29 = vpop.permute.xlu1 %973 }
 0x2c0   :  { %2440 = vmatprep.subr.bf16.mxu0 %v2533_v51  ;;  %722 = vst.msk [vmem:[#allocation2 + $0x4] sm:$0xf] %vm699_vm6, %v717_v28  ;;  %978 = vst.msk [vmem:[#allocation2 + $0x48] sm:$0xf] %vm699_vm6, %v974_v29 }
 0x2c3   :  { %2441 = vmatpush3.bf16.msra.mxu0 %v2533_v51  ;;  %v906_v62 = vpop.permute.xlu0 %905  ;;  %v719_v37 = vpop.permute.xlu1 %718 }
 0x2c4   :  { %911 = vst.msk [vmem:[#allocation2 + $0x28] sm:$0xf] %vm699_vm6, %v906_v62  ;;  %723 = vst.msk [vmem:[#allocation2 + $0x18] sm:$0xf] %vm699_vm6, %v719_v37 }
 0x2c7   :  { %v928_v42 = vpop.permute.xlu0 %927  ;;  %v908_v48 = vpop.permute.xlu1 %907  ;;  %v2524_v43 = vld [vmem:[#allocation2 + $0x34] ss:$20 sps:$4 sm:$0xff]  }
 0x2c8   :  { %933 = vst.msk [vmem:[#allocation2 + $0x2c] sm:$0xf] %vm699_vm6, %v928_v42  ;;  %912 = vst.msk [vmem:[#allocation2 + $0x3c] sm:$0xf] %vm699_vm6, %v908_v48  ;;  %1437 = vmatprep.mubr.bf16.mxu0 %v2524_v43 }
 0x2c9   :  { %1438 = vmatmul.mubr.bf16.gmra.mxu0 %v2527_v44 }
 0x2ca   :  { %2442 = vmatprep.mubr.msk.bf16.mxu0 %vm283_vm5, %v2534_v40 }
 0x2cb   :  { %v930_v45 = vpop.permute.xlu1 %929  ;;  %v2532_v35 = vld [vmem:[#allocation2 + $0x4] ss:$20 sps:$4 sm:$0xff]  }
 0x2cc   :  { %934 = vst.msk [vmem:[#allocation2 + $0x40] sm:$0xf] %vm699_vm6, %v930_v45  ;;  %1380 = vmatprep.mubr.bf16.mxu1 %v2532_v35 }
 0x2cd   :  { %1381 = vmatmul.mubr.bf16.vlgmr.msra.gmra.mxu1 %v2530_v47 }
 0x2ce   :  { %2447 = vmatpush3.bf16.msra.mxu1 %v2539_v16 }
 0x2cf   :  { %v2538_v58 = vld [vmem:[#allocation2 + $0x28] ss:$20 sps:$4 sm:$0xff]   ;;  %2448 = vmatprep.subr.bf16.mxu1 %v2555_v10 }
 0x2d1   :  { %2443 = vmatmul.mubr.msk.bf16.vlgmr.msra.gmra.mxu0 %vm283_vm5, %v2535_v53 }
 0x2d2   :  { %2449 = vmatpush3.bf16.msra.mxu1 %v2540_v24 }
 0x2d3   :  { %v2536_v39 = vld [vmem:[#allocation2 + $0x2c] ss:$20 sps:$4 sm:$0xff]   ;;  %2450 = vmatprep.subr.bf16.mxu1 %v2555_v10 }
 0x2d4   :  { %1388 = vmatprep.mubr.bf16.mxu1 %v2536_v39 }
 0x2d5   :  { %1389 = vmatmul.mubr.bf16.gmra.mxu1 %v2538_v58 }
 0x2d6   :  { %2462 = vmatprep.mubr.msk.bf16.mxu1 %vm2556_vm1, %v2555_v10  ;;  %2451 = vmatpush3.bf16.msra.mxu1 %v2541_v14 }
 0x2d7   :  { %2452 = vmatprep.subr.bf16.mxu1 %v2555_v10 }
 0x2da   :  { %2453 = vmatpush3.bf16.msra.mxu1 %v2542_v31 }
 0x2db   :  { %2454 = vmatprep.subr.bf16.mxu1 %v2555_v10 }
 0x2de   :  { %2455 = vmatpush3.bf16.msra.mxu1 %v2543_v59 }
 0x2df   :  { %2456 = vmatprep.subr.bf16.mxu1 %v2555_v10 }
 0x2e2   :  { %2457 = vmatpush3.bf16.msra.mxu1 %v2544_v8 }
 0x2e3   :  { %2458 = vmatprep.subr.bf16.mxu1 %v2555_v10 }
 0x2e6   :  { %2459 = vmatpush3.bf16.msra.mxu1 %v2545_v18 }
 0x2e7   :  { %2460 = vmatprep.subr.bf16.mxu1 %v2555_v10  ;;  %v3218_v10 = vld [vmem:[%s3385_s5] sm:$0x7] }
 0x2e8   :  { %v1075_v6 = vrot.slane %v3218_v10, %v59_v13 }
 0x2ea   :  { %2461 = vmatpush3.bf16.msra.mxu1 %v2546_v3 }
 0x2ed   :  { %2463 = vmatmul.mubr.bf16.vlgmr.msra.gmra.mxu1 %v1918_v15 }
 0x376   :  { %v2299_v41 = vpop.f32.mrf.mxu0 }
 0x378   :  { %v2300_v2 = vpop.f32.mrf.mxu0 }
 0x379   :  { %v2301_v57 = vadd.f32 %v2300_v2, %v2299_v41 }
 0x37a   :  { %v2302_v4 = vpop.f32.mrf.mxu0 }
 0x37c   :  { %v2303_v38 = vpop.f32.mrf.mxu0 }
 0x37d   :  { %v2304_v1 = vadd.f32 %v2303_v38, %v2302_v4 }
 0x389   :  { %v2305_v5 = vpop.f32.mrf.mxu0 }
 0x38b   :  { %v2306_v50 = vpop.f32.mrf.mxu0 }
 0x38c   :  { %v2307_v56 = vadd.f32 %v2306_v50, %v2305_v5 }
 0x38d   :  { %v2271_v60 = vpop.f32.mrf.mxu1  ;;  %v2308_v61 = vpop.f32.mrf.mxu0 }
 0x38f   :  { %v2272_v7 = vpop.f32.mrf.mxu1  ;;  %v2309_v9 = vpop.f32.mrf.mxu0 }
 0x390   :  { %v2273_v52 = vadd.f32 %v2272_v7, %v2271_v60  ;;  %v2310_v42 = vadd.f32 %v2309_v9, %v2308_v61 }
 0x391   :  { %v2274_v11 = vpop.f32.mrf.mxu1  ;;  %v2444_v54 = vpop.f32.mrf.mxu0 }
 0x392   :  { %v1383_v36 = vadd.f32 %v2273_v52, %v1075_v6 }
 0x393   :  { %v2275_v17 = vpop.f32.mrf.mxu1  ;;  %v1480_v19 = vpop.f32.mrf.mxu0 }
 0x394   :  { %v2276_v34 = vadd.f32 %v2275_v17, %v2274_v11  ;;  %v1432_v20 = vadd.f32 %v2301_v57, %v1383_v36 }
 0x395   :  { %v2277_v49 = vpop.f32.mrf.mxu1  ;;  %v2445_v63 = vpop.f32.mrf.mxu0 }
 0x396   :  { %v1386_v22 = vadd.f32 %v2276_v34, %v1075_v6  ;;  %v1481_v25 = vadd.f32 %v1480_v19, %v1432_v20 }
 0x397   :  { %v2278_v32 = vpop.f32.mrf.mxu1  ;;  %v1483_v27 = vpop.f32.mrf.mxu0 }
 0x398   :  { %vm1495_vm1 = vcmp.ge.f32.partialorder %v1481_v25, 0.0  ;;  %v1499_v55 = vmul.f32 0.01, %v1481_v25  ;;  %v2279_v13 = vadd.f32 %v2278_v32, %v2277_v49  ;;  %v1435_v26 = vadd.f32 %v2304_v1, %v1386_v22 }
 0x399   :  { %v2280_v21 = vpop.f32.mrf.mxu1 }
 0x39a   :  { %v1391_v51 = vadd.f32 %v2279_v13, %v1075_v6  ;;  %v1484_v46 = vadd.f32 %v1483_v27, %v1435_v26  ;;  %v1503_v28 = vsel %vm1495_vm1, %v1481_v25, %v1499_v55 }
 0x39b   :  { %v2281_v29 = vpop.f32.mrf.mxu1  ;;  %v1507_v45 = vsel %vm283_vm5, %v1503_v28, 0.0 }
 0x39c   :  { %v1440_v62 = vadd.f32 %v2307_v56, %v1391_v51  ;;  %vm1496_vm7 = vcmp.ge.f32.partialorder %v1484_v46, 0.0  ;;  %v1500_v37 = vmul.f32 0.01, %v1484_v46  ;;  %v2282_v40 = vadd.f32 %v2281_v29, %v2280_v21 }
 0x39e   :  { %v1489_v48 = vadd.f32 %v2444_v54, %v1440_v62  ;;  %v1504_v43 = vsel %vm1496_vm7, %v1484_v46, %v1500_v37  ;;  %v1394_v44 = vadd.f32 %v2282_v40, %v1075_v6 }
 0x39f   :  { %v1508_v47 = vsel %vm283_vm5, %v1504_v43, 0.0 }
 0x3a0   :  { %v1501_v35 = vmul.f32 0.01, %v1489_v48  ;;  %v1509_v53 = vadd.f32 %v1508_v47, %v1507_v45  ;;  %v1443_v39 = vadd.f32 %v2310_v42, %v1394_v44  ;;  %vm1497_vm8 = vcmp.ge.f32.partialorder %v1489_v48, 0.0 }
 0x3a1   :  { %v2558_v42 = vmov 1966171168   ;;  %v1575_v45 = vrot.slane %v3218_v10, %v2845_v33  ;;  %v1586_v33 = vld [vmem:[#allocation3] sm:$0x1] }
 0x3a2   :  { %v1510_v58 = vrot.slane %v1509_v53, 4  ;;  %v1492_v16 = vadd.f32 %v2445_v63, %v1443_v39  ;;  %v1505_v24 = vsel %vm1497_vm8, %v1489_v48, %v1501_v35  ;;  %v1591_v48 = vunpack.c.l.s4 %v2558_v42 }
 0x3a3   :  { %v1516_v18 = vsel %vm283_vm5, %v1505_v24, 0.0 }
 0x3a4   :  { %v1511_v14 = vadd.f32 %v1510_v58, %v1509_v53  ;;  %vm1498_vm9 = vcmp.ge.f32.partialorder %v1492_v16, 0.0  ;;  %v1502_v31 = vmul.f32 0.01, %v1492_v16  ;;  %v1592_v53 = vunpack.c.0.s8 %v1591_v48 }
 0x3a6   :  { %v1512_v59 = vrot.slane %v1511_v14, 2  ;;  %v1506_v8 = vsel %vm1498_vm9, %v1492_v16, %v1502_v31 }
 0x3a7   :  { %v1517_v3 = vsel %vm283_vm5, %v1506_v8, 0.0 }
 0x3a8   :  { %v1513_v0 = vadd.f32 %v1512_v59, %v1511_v14  ;;  %v1518_v23 = vadd.f32 %v1517_v3, %v1516_v18  ;;  %v3237_v14 = vsub.s32 %v1592_v53, %v2654_v12 }
 0x3aa   :  { %v1514_v15 = vrot.slane %v1513_v0, 1  ;;  %v1519_v41 = vrot.slane %v1518_v23, 4 }
 0x3ac   :  { %v1515_v2 = vadd.f32 %v1514_v15, %v1513_v0  ;;  %v1520_v4 = vadd.f32 %v1519_v41, %v1518_v23 }
 0x3ae   :  { %v1526_v38 = vmul.f32 0.0625, %v1515_v2  ;;  %v1521_v5 = vrot.slane %v1520_v4, 2 }
 0x3b0   :  { %v1528_v50 = vsub.f32 %v1503_v28, %v1526_v38  ;;  %v1529_v60 = vsub.f32 %v1504_v43, %v1526_v38  ;;  %v1522_v61 = vadd.f32 %v1521_v5, %v1520_v4  ;;  %v1567_v43 = vrot.slane %v3218_v10, %v427_v30 }
 0x3b2   :  { %v1532_v6 = vmul.f32 %v1528_v50, %v1528_v50  ;;  %v1533_v7 = vmul.f32 %v1529_v60, %v1529_v60  ;;  %v1523_v9 = vrot.slane %v1522_v61, 1 }
 0x3b4   :  { %v1536_v52 = vsel %vm283_vm5, %v1532_v6, 0.0  ;;  %v1537_v11 = vsel %vm283_vm5, %v1533_v7, 0.0  ;;  %v1524_v54 = vadd.f32 %v1523_v9, %v1522_v61  ;;  %v1642_v61 = vld [vmem:[#allocation3 + $0x2] sm:$0x1]  ;;  %v1727_v6 = vld [vmem:[#allocation3 + $0x6] sm:$0x1] }
 0x3b5   :  { %v1538_v57 = vadd.f32 %v1537_v11, %v1536_v52  ;;  %v1658_v9 = vld [vmem:[#allocation3 + $0x3] sm:$0x1]  ;;  %v1743_v11 = vld [vmem:[#allocation3 + $0x7] sm:$0x1] }
 0x3b6   :  { %v1527_v36 = vmul.f32 0.0625, %v1524_v54 }
 0x3b7   :  { %v1539_v17 = vrot.slane %v1538_v57, 4 }
 0x3b8   :  { %v1531_v19 = vsub.f32 %v1506_v8, %v1527_v36  ;;  %v1530_v34 = vsub.f32 %v1505_v24, %v1527_v36 }
 0x3b9   :  { %v1540_v20 = vadd.f32 %v1539_v17, %v1538_v57 }
 0x3ba   :  { %v1535_v49 = vmul.f32 %v1531_v19, %v1531_v19  ;;  %v1534_v63 = vmul.f32 %v1530_v34, %v1530_v34 }
 0x3bb   :  { %v1541_v1 = vrot.slane %v1540_v20, 2 }
 0x3bc   :  { %v1546_v22 = vsel %vm283_vm5, %v1535_v49, 0.0  ;;  %v1545_v25 = vsel %vm283_vm5, %v1534_v63, 0.0  ;;  %vm1583_vm5 = vcmask 516096  }
 0x3bd   :  { %v1542_v32 = vadd.f32 %v1541_v1, %v1540_v20  ;;  %v1547_v55 = vadd.f32 %v1546_v22, %v1545_v25  ;;  %vm3241_vm11 = vmand %vm1583_vm5, %vm1584_vm10  ;;  %v1688_v20 = vld [vmem:[#allocation3 + $0x4] sm:$0x1]  ;;  %v1711_v1 = vld [vmem:[#allocation3 + $0x5] sm:$0x1] }
 0x3be   :  { %vm3321_vm15 = vmand %vm1583_vm5, %vm1776_vm14 }
 0x3bf   :  { %v1543_v13 = vrot.slane %v1542_v32, 1  ;;  %v1548_v26 = vrot.slane %v1547_v55, 4 }
 0x3c1   :  { %v1544_v21 = vadd.f32 %v1543_v13, %v1542_v32  ;;  %v1549_v27 = vadd.f32 %v1548_v26, %v1547_v55 }
 0x3c3   :  { %v1554_v56 = vmul.f32 0.0625, %v1544_v21  ;;  %v1550_v51 = vrot.slane %v1549_v27, 2 }
 0x3c5   :  { %v1556_v46 = vadd.f32 1e-05, %v1554_v56  ;;  %v1551_v28 = vadd.f32 %v1550_v51, %v1549_v27 }
 0x3c7   :  { %2551 = vrsqrt.f32 %v1556_v46  ;;  %v1552_v29 = vrot.slane %v1551_v28, 1 }
 0x3c9   :  { %v1553_v62 = vadd.f32 %v1552_v29, %v1551_v28 }
 0x3cb   :  { %v1555_v37 = vmul.f32 0.0625, %v1553_v62 }
 0x3cd   :  { %v1557_v40 = vadd.f32 1e-05, %v1555_v37 }
 0x3cf   :  { %2553 = vrsqrt.f32 %v1557_v40  ;;  %v2024_v40 = vpop.f32.mrf.mxu1 }
 0x3d1   :  { %v2464_v48 = vpop.f32.mrf.mxu1 }
 0x3d4   :  { %v2552_v44 = vpop.eup %2551 }
 0x3d5   :  { %v1560_v47 = vmul.f32 %v2552_v44, %v1528_v50  ;;  %v1561_v35 = vmul.f32 %v2552_v44, %v1529_v60 }
 0x3d7   :  { %v1569_v39 = vmul.f32 %v1567_v43, %v1561_v35  ;;  %v1568_v58 = vmul.f32 %v1567_v43, %v1560_v47  ;;  %v2174_v35 = vld [vmem:[%s3386_s9] ss:$0 sm:$0xff] }
 0x3d9   :  { %v1576_v16 = vadd.f32 %v1575_v45, %v1568_v58  ;;  %v1577_v24 = vadd.f32 %v1575_v45, %v1569_v39 }
 0x3db   :  { %v1581_v31 = vpack.c.bf16 %v1577_v24, %v1576_v16  ;;  %v2168_v59 = vpack.c.bf16 %v1577_v24, %v1577_v24  ;;  %v2025_v16 = vadd.f32 %v2174_v35, %v2024_v40 }
 0x3dc   :  { %v2554_v10 = vpop.eup %2553 }
 0x3dd   :  { %v1596_v8 = vrot.slane %v1581_v31, %v3237_v14  ;;  %v1679_v18 = vrot.slane %v2168_v59, %v3237_v14  ;;  %v1562_v3 = vmul.f32 %v2554_v10, %v1530_v34  ;;  %v1563_v0 = vmul.f32 %v2554_v10, %v1531_v19  ;;  %v1626_v34 = vld [vmem:[#allocation3 + $0x1] sm:$0x1]  ;;  %2030 = vst [vmem:[%s3387_s10] sm:$0x3] %v2025_v16 }
 0x3de   :  { %v1587_v12 = vsel %vm3241_vm11, %v1581_v31, %v1586_v33 }
 0x3df   :  { %v1603_v23 = vrot.slane %v1596_v8, %v3237_v14  ;;  %v1617_v15 = vcombine.high %v1596_v8, %v1596_v8  ;;  %v1686_v41 = vrot.slane %v1679_v18, %v3237_v14  ;;  %v1702_v2 = vcombine.high %v1679_v18, %v1679_v18  ;;  %1588 = vst [vmem:[#allocation3] sm:$0x1] %v1587_v12 }
 0x3e0   :  { %v1570_v4 = vmul.f32 %v1567_v43, %v1562_v3  ;;  %v1571_v38 = vmul.f32 %v1567_v43, %v1563_v0 }
 0x3e1   :  { %v1605_v5 = vshrl.u32 %v1603_v23, 16  ;;  %v1624_v50 = vrot.slane %v1617_v15, %v3237_v14  ;;  %v1709_v60 = vrot.slane %v1702_v2, %v3237_v14  ;;  %v1640_v7 = vcombine.high %v1603_v23, %v1603_v23 }
 0x3e2   :  { %v1725_v52 = vcombine.high %v1686_v41, %v1686_v41  ;;  %v1578_v54 = vadd.f32 %v1575_v45, %v1570_v4  ;;  %v1579_v19 = vadd.f32 %v1575_v45, %v1571_v38  ;;  %v1692_v22 = vshrl.u32 %v1686_v41, 16  ;;  %v2027_v45 = vpop.f32.mrf.mxu1 }
 0x3e3   :  { %1609 = vrot.lane.b32.xlu0 %v1605_v5, %s2557_s0  ;;  %v1630_v57 = vshrl.u32 %v1624_v50, 16  ;;  %v1656_v36 = vcombine.high %v1624_v50, %v1624_v50  ;;  %v1741_v17 = vcombine.high %v1709_v60, %v1709_v60  ;;  %v1643_v49 = vsel %vm3241_vm11, %v1640_v7, %v1642_v61 }
 0x3e4   :  { %v1728_v63 = vsel %vm3241_vm11, %v1725_v52, %v1727_v6  ;;  %1644 = vst [vmem:[#allocation3 + $0x2] sm:$0x1] %v1643_v49  ;;  %v1627_v55 = vsel %vm3241_vm11, %v1624_v50, %v1626_v34  ;;  %v1689_v13 = vsel %vm3241_vm11, %v1686_v41, %v1688_v20  ;;  %v1715_v26 = vshrl.u32 %v1709_v60, 16  ;;  %v2465_v53 = vpop.f32.mrf.mxu1 }
 0x3e5   :  { %1634 = vrot.lane.b32.xlu1 %v1630_v57, %s2557_s0  ;;  %v1659_v25 = vsel %vm3241_vm11, %v1656_v36, %v1658_v9  ;;  %1729 = vst [vmem:[#allocation3 + $0x6] sm:$0x1] %v1728_v63  ;;  %v1744_v32 = vsel %vm3241_vm11, %v1741_v17, %v1743_v11  ;;  %v1582_v21 = vpack.c.bf16 %v1579_v19, %v1578_v54  ;;  %1628 = vst [vmem:[#allocation3 + $0x1] sm:$0x1] %v1627_v55 }
 0x3e6   :  { %1660 = vst [vmem:[#allocation3 + $0x3] sm:$0x1] %v1659_v25  ;;  %1745 = vst [vmem:[#allocation3 + $0x7] sm:$0x1] %v1744_v32  ;;  %v1712_v27 = vsel %vm3241_vm11, %v1709_v60, %v1711_v1  ;;  %v1646_v56 = vshrl.u32 %v1640_v7, 16  ;;  %v1662_v51 = vshrl.u32 %v1656_v36, 16  ;;  %v2173_v37 = vpack.c.bf16 %v1579_v19, %v1579_v19 }
 0x3e7   :  { %1696 = vrot.lane.b32.xlu0 %v1692_v22, %s2557_s0  ;;  %1690 = vst [vmem:[#allocation3 + $0x4] sm:$0x1] %v1689_v13  ;;  %1713 = vst [vmem:[#allocation3 + $0x5] sm:$0x1] %v1712_v27  ;;  %v1764_v46 = vrot.slane %v1582_v21, %v3237_v14  ;;  %v1731_v28 = vshrl.u32 %v1725_v52, 16  ;;  %v1747_v29 = vshrl.u32 %v1741_v17, 16 }
 0x3e8   :  { %v1844_v44 = vrot.slane %v2173_v37, %v3237_v14  ;;  %v1614_v10 = vld [vmem:[#allocation3] sm:$0x1] }
 0x3e9   :  { %1719 = vrot.lane.b32.xlu1 %v1715_v26, %s2557_s0  ;;  %v1788_v62 = vcombine.high %v1764_v46, %v1764_v46  ;;  %v1771_v42 = vrot.slane %v1764_v46, %v3237_v14 }
 0x3ea   :  { %v1865_v58 = vcombine.high %v1844_v44, %v1844_v44  ;;  %v1851_v24 = vrot.slane %v1844_v44, %v3237_v14 }
 0x3eb   :  { %1650 = vrot.lane.b32.xlu0 %v1646_v56, %s2557_s0  ;;  %v1795_v43 = vrot.slane %v1788_v62, %v3237_v14  ;;  %v3281_v47 = vcombine.high %v1771_v42, %v1771_v42  ;;  %v1773_v5 = vshll.u32 %v1771_v42, 16  ;;  %v1653_v50 = vld [vmem:[#allocation3 + $0x2] sm:$0x1] }
 0x3ec   :  { %v1872_v31 = vrot.slane %v1865_v58, %v3237_v14  ;;  %v3299_v59 = vcombine.high %v1851_v24, %v1851_v24  ;;  %v1637_v3 = vld [vmem:[#allocation3 + $0x1] sm:$0x1]  ;;  %v1853_v36 = vshll.u32 %v1851_v24, 16  ;;  %v1738_v19 = vld [vmem:[#allocation3 + $0x6] sm:$0x1] }
 0x3ed   :  { %1666 = vrot.lane.b32.xlu1 %v1662_v51, %s2557_s0  ;;  %v3288_v39 = vcombine.high %v1795_v43, %v1795_v43  ;;  %v1797_v7 = vshll.u32 %v1795_v43, 16  ;;  %v1669_v52 = vld [vmem:[#allocation3 + $0x3] sm:$0x1]  ;;  %v1754_v22 = vld [vmem:[#allocation3 + $0x7] sm:$0x1]  ;;  %v1811_v13 = vshll.u32 %v3281_v47, 16 }
 0x3ee   :  { %v3303_v30 = vcombine.high %v1872_v31, %v1872_v31  ;;  %v1699_v12 = vld [vmem:[#allocation3 + $0x4] sm:$0x1]  ;;  %v1722_v41 = vld [vmem:[#allocation3 + $0x5] sm:$0x1]  ;;  %v1874_v63 = vshll.u32 %v1872_v31, 16  ;;  %v1888_v40 = vshll.u32 %v3299_v59, 16 }
 0x3ef   :  { %1735 = vrot.lane.b32.xlu0 %v1731_v28, %s2557_s0  ;;  %v1825_v51 = vshll.u32 %v3288_v39, 16 }
 0x3f1   :  { %1751 = vrot.lane.b32.xlu1 %v1747_v29, %s2557_s0 }
 0x3f3   :  { %1781 = vrot.lane.b32.xlu0 %v1771_v42, %s2557_s0 }
 0x3f5   :  { %1803 = vrot.lane.b32.xlu1 %v1795_v43, %s2557_s0 }
 0x3f7   :  { %1817 = vrot.lane.b32.xlu0 %v3281_v47, %s2557_s0  ;;  %v1902_v47 = vshll.u32 %v3303_v30, 16 }
 0x3f9   :  { %1831 = vrot.lane.b32.xlu1 %v3288_v39, %s2557_s0 }
 0x3fb   :  { %1859 = vrot.lane.b32.xlu0 %v1851_v24, %s2557_s0 }
 0x3fd   :  { %1880 = vrot.lane.b32.xlu1 %v1872_v31, %s2557_s0 }
 0x3ff   :  { %1894 = vrot.lane.b32.xlu0 %v3299_v59, %s2557_s0 }
 0x401   :  { %1908 = vrot.lane.b32.xlu1 %v3303_v30, %s2557_s0 }
 0x455   :  { %v1610_v14 = vpop.permute.xlu0 %1609 }
 0x456   :  { %v1615_v8 = vsel %vm3309_vm13, %v1610_v14, %v1614_v10 }
 0x457   :  { %1616 = vst [vmem:[#allocation3] sm:$0x1] %v1615_v8  ;;  %v1635_v18 = vpop.permute.xlu1 %1634 }
 0x458   :  { %v1638_v0 = vsel %vm3309_vm13, %v1635_v18, %v1637_v3 }
 0x459   :  { %1639 = vst [vmem:[#allocation3 + $0x1] sm:$0x1] %v1638_v0  ;;  %v1697_v23 = vpop.permute.xlu0 %1696 }
 0x45a   :  { %v1700_v15 = vsel %vm3309_vm13, %v1697_v23, %v1699_v12 }
 0x45b   :  { %1701 = vst [vmem:[#allocation3 + $0x4] sm:$0x1] %v1700_v15  ;;  %v1720_v2 = vpop.permute.xlu1 %1719 }
 0x45c   :  { %v1723_v38 = vsel %vm3309_vm13, %v1720_v2, %v1722_v41 }
 0x45d   :  { %1724 = vst [vmem:[#allocation3 + $0x5] sm:$0x1] %v1723_v38  ;;  %v1651_v60 = vpop.permute.xlu0 %1650 }
 0x45e   :  { %v1778_v61 = vld [vmem:[#allocation3] sm:$0x1]  ;;  %v1654_v6 = vsel %vm3309_vm13, %v1651_v60, %v1653_v50 }
 0x45f   :  { %v1779_v9 = vsel %vm3321_vm15, %v1773_v5, %v1778_v61  ;;  %1655 = vst [vmem:[#allocation3 + $0x2] sm:$0x1] %v1654_v6  ;;  %v1667_v11 = vpop.permute.xlu1 %1666 }
 0x460   :  { %1780 = vst [vmem:[#allocation3] sm:$0x1] %v1779_v9  ;;  %v1800_v54 = vld [vmem:[#allocation3 + $0x1] sm:$0x1]  ;;  %v1670_v57 = vsel %vm3309_vm13, %v1667_v11, %v1669_v52 }
 0x461   :  { %v1801_v17 = vsel %vm3321_vm15, %v1797_v7, %v1800_v54  ;;  %1671 = vst [vmem:[#allocation3 + $0x3] sm:$0x1] %v1670_v57  ;;  %v1736_v34 = vpop.permute.xlu0 %1735 }
 0x462   :  { %1802 = vst [vmem:[#allocation3 + $0x1] sm:$0x1] %v1801_v17  ;;  %v1856_v20 = vld [vmem:[#allocation3 + $0x4] sm:$0x1]  ;;  %v1739_v49 = vsel %vm3309_vm13, %v1736_v34, %v1738_v19 }
 0x463   :  { %v1857_v1 = vsel %vm3321_vm15, %v1853_v36, %v1856_v20  ;;  %1740 = vst [vmem:[#allocation3 + $0x6] sm:$0x1] %v1739_v49  ;;  %v1752_v25 = vpop.permute.xlu1 %1751 }
 0x464   :  { %1858 = vst [vmem:[#allocation3 + $0x4] sm:$0x1] %v1857_v1  ;;  %v1877_v32 = vld [vmem:[#allocation3 + $0x5] sm:$0x1]  ;;  %v1755_v55 = vsel %vm3309_vm13, %v1752_v25, %v1754_v22 }
 0x465   :  { %v1878_v26 = vsel %vm3321_vm15, %v1874_v63, %v1877_v32  ;;  %1756 = vst [vmem:[#allocation3 + $0x7] sm:$0x1] %v1755_v55  ;;  %v1782_v27 = vpop.permute.xlu0 %1781 }
 0x466   :  { %1879 = vst [vmem:[#allocation3 + $0x5] sm:$0x1] %v1878_v26  ;;  %v1814_v56 = vld [vmem:[#allocation3 + $0x2] sm:$0x1] }
 0x467   :  { %v1815_v46 = vsel %vm3321_vm15, %v1811_v13, %v1814_v56  ;;  %v1785_v28 = vld [vmem:[#allocation3] sm:$0x1]  ;;  %v1804_v29 = vpop.permute.xlu1 %1803 }
 0x468   :  { %1816 = vst [vmem:[#allocation3 + $0x2] sm:$0x1] %v1815_v46  ;;  %v1828_v62 = vld [vmem:[#allocation3 + $0x3] sm:$0x1]  ;;  %v1786_v37 = vsel %vm3346_vm0, %v1782_v27, %v1785_v28 }
 0x469   :  { %v1829_v42 = vsel %vm3321_vm15, %v1825_v51, %v1828_v62  ;;  %1787 = vst [vmem:[#allocation3] sm:$0x1] %v1786_v37  ;;  %v1806_v48 = vld [vmem:[#allocation3 + $0x1] sm:$0x1]  ;;  %v1818_v43 = vpop.permute.xlu0 %1817 }
 0x46a   :  { %1830 = vst [vmem:[#allocation3 + $0x3] sm:$0x1] %v1829_v42  ;;  %v1891_v44 = vld [vmem:[#allocation3 + $0x6] sm:$0x1]  ;;  %v1807_v45 = vsel %vm3346_vm0, %v1804_v29, %v1806_v48 }
 0x46b   :  { %v1892_v35 = vsel %vm3321_vm15, %v1888_v40, %v1891_v44  ;;  %1808 = vst [vmem:[#allocation3 + $0x1] sm:$0x1] %v1807_v45  ;;  %v1832_v53 = vpop.permute.xlu1 %1831  ;;  %v1862_v16 = vld [vmem:[#allocation3 + $0x4] sm:$0x1] }
 0x46c   :  { %1893 = vst [vmem:[#allocation3 + $0x6] sm:$0x1] %v1892_v35  ;;  %v1905_v39 = vld [vmem:[#allocation3 + $0x7] sm:$0x1] }
 0x46d   :  { %v1906_v58 = vsel %vm3321_vm15, %v1902_v47, %v1905_v39  ;;  %v1860_v24 = vpop.permute.xlu0 %1859  ;;  %v1883_v33 = vld [vmem:[#allocation3 + $0x5] sm:$0x1] }
 0x46e   :  { %1907 = vst [vmem:[#allocation3 + $0x7] sm:$0x1] %v1906_v58  ;;  %v1863_v31 = vsel %vm3346_vm0, %v1860_v24, %v1862_v16 }
 0x46f   :  { %v1820_v59 = vld [vmem:[#allocation3 + $0x2] sm:$0x1]  ;;  %1864 = vst [vmem:[#allocation3 + $0x4] sm:$0x1] %v1863_v31  ;;  %v1881_v30 = vpop.permute.xlu1 %1880 }
 0x470   :  { %v1821_v14 = vsel %vm3346_vm0, %v1818_v43, %v1820_v59  ;;  %v1884_v10 = vsel %vm3346_vm0, %v1881_v30, %v1883_v33 }
 0x471   :  { %1822 = vst [vmem:[#allocation3 + $0x2] sm:$0x1] %v1821_v14  ;;  %v1834_v8 = vld [vmem:[#allocation3 + $0x3] sm:$0x1]  ;;  %1885 = vst [vmem:[#allocation3 + $0x5] sm:$0x1] %v1884_v10  ;;  %v1895_v0 = vpop.permute.xlu0 %1894 }
 0x472   :  { %v1835_v18 = vsel %vm3346_vm0, %v1832_v53, %v1834_v8 }
 0x473   :  { %1836 = vst [vmem:[#allocation3 + $0x3] sm:$0x1] %v1835_v18  ;;  %v1897_v3 = vld [vmem:[#allocation3 + $0x6] sm:$0x1]  ;;  %v1909_v15 = vpop.permute.xlu1 %1908 }
 0x474   :  { %v1898_v12 = vsel %vm3346_vm0, %v1895_v0, %v1897_v3 }
 0x475   :  { %1899 = vst [vmem:[#allocation3 + $0x6] sm:$0x1] %v1898_v12  ;;  %v1911_v23 = vld [vmem:[#allocation3 + $0x7] sm:$0x1] }
 0x476   :  { %v1912_v41 = vsel %vm3346_vm0, %v1909_v15, %v1911_v23 }
 0x477   :  { %1913 = vst [vmem:[#allocation3 + $0x7] sm:$0x1] %v1912_v41 }

</bundles_post_ra>
